<compile_context>
chip_gen: v7x
topology: tpu7x:2x2x1
jax: 0.10.0
libtpu: 0.0.40
codegen_flags: <defaults>
</compile_context>

<pallas_src>
import functools

import jax
import jax.numpy as jnp
from jax import lax
from jax.experimental import pallas as pl
from jax.experimental.pallas import tpu as pltpu

# module config (defaults of MoGeMesh.__init__)
DEPTH_EDGE_RTOL = 0.05
INVALID_MESH_COLOR = (0.0, 0.0, 0.0)
VALID_ALPHA = 1.0
BACKGROUND_ALPHA = 1.0
INVALID_ALPHA = -1.0

_POS_INF = float("inf")
_NEG_INF = float("-inf")


# ---------------------------------------------------------------------------
# Pallas kernel: one (batch, row-tile) step.
# ---------------------------------------------------------------------------
def _moge_mesh_kernel(kinv_ref, largest_ref, a_ref, top_ref, bot_ref, out_ref,
                      *, th, wp, h_real, w_real):
    """Refs:
      kinv_ref   : (B*9,) f32 SMEM  -- row-major inverse intrinsics per batch
      largest_ref: (B,)   f32 SMEM  -- per-image largest valid depth
      a_ref      : (1, th, Wp) f32  -- a = where(mask, depth, +inf), current rows
      top_ref    : (1, 8,  Wp) f32  -- 8-row block whose last row is row r0-1
      bot_ref    : (1, 8,  Wp) f32  -- 8-row block whose first row is row r0+th
      out_ref    : (1, 5, th, Wp) f32 -- planes [X, Y, Z, alpha, edge]
    """
    b = pl.program_id(0)
    r = pl.program_id(1)
    r0 = r * th

    a_c = a_ref[0, :, :]                               # (th, Wp)
    top_row = top_ref[0, :, :][7:8, :]                 # (1, Wp) = row r0-1 (valid iff r0 > 0)
    bot_row = bot_ref[0, :, :][0:1, :]                 # (1, Wp) = row r0+th (valid iff real)

    row = lax.broadcasted_iota(jnp.int32, (th, 1), 0)  # local row
    col = lax.broadcasted_iota(jnp.int32, (1, wp), 1)  # column
    grow = row + r0                                    # global row

    # --- separable 3x3 max/min pool of `a` with -inf/+inf implicit padding ---
    # maxpool(where(mask, depth, +inf)) and -maxpool(where(mask, -depth, -inf))
    # share the same shifted tensors (the latter equals minpool(a)).
    up = pltpu.roll(a_c, 1, axis=0)          # pos i <- a_c[i-1]; pos 0 patched below
    dn = pltpu.roll(a_c, th - 1, axis=0)     # pos i <- a_c[i+1]; pos th-1 patched below
    row_first = row == 0
    row_last = row == th - 1
    has_top = r0 > 0
    above_max = jnp.where(has_top, top_row, _NEG_INF)  # (1, Wp), cheap
    above_min = jnp.where(has_top, top_row, _POS_INF)
    below_pad = grow >= (h_real - 1)                   # last real row, or padded row
    dn_sel = jnp.where(row_last, bot_row, dn)          # shared for max/min
    up_max = jnp.where(row_first, above_max, up)
    up_min = jnp.where(row_first, above_min, up)
    dn_max = jnp.where(below_pad, _NEG_INF, dn_sel)
    dn_min = jnp.where(below_pad, _POS_INF, dn_sel)
    vmax = jnp.maximum(jnp.maximum(a_c, up_max), dn_max)
    vmin = jnp.minimum(jnp.minimum(a_c, up_min), dn_min)

    col_first = col == 0
    col_last = col == (w_real - 1)
    lmax = jnp.where(col_first, _NEG_INF, pltpu.roll(vmax, 1, axis=1))
    rmax = jnp.where(col_last, _NEG_INF, pltpu.roll(vmax, wp - 1, axis=1))
    lmin = jnp.where(col_first, _POS_INF, pltpu.roll(vmin, 1, axis=1))
    rmin = jnp.where(col_last, _POS_INF, pltpu.roll(vmin, wp - 1, axis=1))
    pool_max = jnp.maximum(jnp.maximum(vmax, lmax), rmax)
    pool_min = jnp.minimum(jnp.minimum(vmin, lmin), rmin)
    diff = pool_max - pool_min               # >= 0, +inf, or NaN (all-invalid window)

    # --- filled depth + division-free edge test ------------------------------
    largest = largest_ref[b]
    valid = a_c < _POS_INF                   # == original mask
    depth_f = jnp.where(valid, a_c, largest)
    # nan_to_num(diff / depth_f) > rtol  <=>  (diff > rtol*depth_f) & (depth_f >= 0)
    edge = (diff > DEPTH_EDGE_RTOL * depth_f) & (depth_f >= 0.0)

    # --- unproject_cv: (Kinv @ [u, v, 1]) * depth, uv at pixel centers -------
    base = b * 9
    k00 = kinv_ref[base + 0]; k01 = kinv_ref[base + 1]; k02 = kinv_ref[base + 2]
    k10 = kinv_ref[base + 3]; k11 = kinv_ref[base + 4]; k12 = kinv_ref[base + 5]
    k20 = kinv_ref[base + 6]; k21 = kinv_ref[base + 7]; k22 = kinv_ref[base + 8]
    u = (col.astype(jnp.float32) + 0.5) * (1.0 / w_real)    # (1, Wp)
    v = (grow.astype(jnp.float32) + 0.5) * (1.0 / h_real)   # (th, 1)
    out_ref[0, 0] = (k00 * u + k01 * v + k02) * depth_f
    out_ref[0, 1] = (k10 * u + k11 * v + k12) * depth_f
    out_ref[0, 2] = (k20 * u + k21 * v + k22) * depth_f

    # --- alpha + edge planes (rgb recolor is done channel-last in the wrapper)
    alpha = jnp.where(valid, VALID_ALPHA, BACKGROUND_ALPHA)
    alpha = jnp.where(edge | (depth_f < 0.0), INVALID_ALPHA, alpha)
    out_ref[0, 3] = alpha
    out_ref[0, 4] = edge.astype(jnp.float32)


# ---------------------------------------------------------------------------
# Tiling / VMEM sizing helpers
# ---------------------------------------------------------------------------
def _round_up(x, m):
    return ((x + m - 1) // m) * m


def _vmem_capacity_bytes():
    try:
        cap = int(getattr(pltpu.get_tpu_info(), "vmem_capacity_bytes", 0))
    except Exception:
        cap = 0
    return cap if cap > 0 else (64 << 20)   # conservative fallback (v7x-sized)


def _pick_tiling(height, width, row_block=None):
    """Pick row tile th (mult. of 8, divides padded H) and padded extents."""
    wp = _round_up(width, 128)              # lane-dense, unmasked vst on every plane
    h8 = _round_up(height, 8)
    if row_block is not None:
        if row_block <= 0 or row_block % 8 != 0:
            raise ValueError(f"row_block must be a positive multiple of 8, got {row_block}")
        th = row_block
    else:
        cap = _vmem_capacity_bytes()
        # ~per-row VMEM: double-buffered a (1) + out (5) planes + ~18 live temporaries.
        per_row = 30 * wp * 4
        budget = max(8 << 20, min((2 * cap) // 5, 40 << 20))   # generation aware
        th_target = max(8, min(((budget // per_row) // 8) * 8, 512))
        th_target = min(th_target, h8)
        n_even = -(-h8 // th_target)                           # ceil
        th = _round_up(-(-h8 // n_even), 8)                    # even split -> minimal padding
    n_rt = -(-h8 // th)
    hp = n_rt * th
    return th, n_rt, hp, wp


# ---------------------------------------------------------------------------
# pallas_call wrapper
# ---------------------------------------------------------------------------
def _run_pixel_kernel(a_pad, kinv_flat, largest, *, th, n_rt, h_real, w_real):
    B, hp, wp = a_pad.shape
    hb = th // 8                     # halo stride in units of 8-row blocks
    n_hblk = hp // 8

    kernel = functools.partial(_moge_mesh_kernel, th=th, wp=wp,
                               h_real=h_real, w_real=w_real)

    row_bytes = 4 * wp
    vmem_need = (2 * th * row_bytes          # `a` center tile, double-buffered
                 + 2 * 2 * 8 * row_bytes     # two 8-row halos, double-buffered
                 + 2 * 5 * th * row_bytes    # output slab, double-buffered
                 + 20 * th * row_bytes       # live (th, Wp) f32 intermediates
                 + (2 << 20))                # compiler scratch headroom
    cap = _vmem_capacity_bytes()
    vmem_limit = int(min(max(2 * vmem_need, 32 << 20), (cap * 4) // 5))
    vmem_limit = max(vmem_limit, vmem_need)

    cost = pl.CostEstimate(
        flops=40 * B * hp * wp, transcendentals=0,
        bytes_accessed=4 * (1 + 5) * B * hp * wp + 4 * 16 * B * n_rt * wp)

    grid_spec = pltpu.PrefetchScalarGridSpec(
        num_scalar_prefetch=0,
        grid=(B, n_rt),
        in_specs=[
            pl.BlockSpec(memory_space=pltpu.MemorySpace.SMEM),       # kinv (B*9,)
            pl.BlockSpec(memory_space=pltpu.MemorySpace.SMEM),       # largest (B,)
            pl.BlockSpec((1, th, wp), lambda b, r: (b, r, 0)),       # a center tile
            pl.BlockSpec((1, 8, wp),                                 # top halo (row r0-1)
                         lambda b, r: (b, jnp.maximum(r * hb - 1, 0), 0)),
            pl.BlockSpec((1, 8, wp),                                 # bottom halo (row r0+th)
                         lambda b, r: (b, jnp.minimum((r + 1) * hb, n_hblk - 1), 0)),
        ],
        out_specs=pl.BlockSpec((1, 5, th, wp), lambda b, r: (b, 0, r, 0)),
    )
    out5 = pl.pallas_call(
        kernel,
        out_shape=jax.ShapeDtypeStruct((B, 5, hp, wp), jnp.float32),
        grid_spec=grid_spec,
        compiler_params=pltpu.CompilerParams(
            dimension_semantics=("parallel", "parallel"),
            vmem_limit_bytes=vmem_limit),
        cost_estimate=cost,
    )(kinv_flat, largest, a_pad, a_pad, a_pad)
    return out5


# ---------------------------------------------------------------------------
# Glue: faces / uv construction (image_mesh + triangulate with mask=None).
# ---------------------------------------------------------------------------
def _build_faces(H, W):
    col = jnp.arange(W - 1, dtype=jnp.int32)
    row_faces = jnp.stack([col, col + W, col + W + 1, col + 1], axis=1)  # (W-1, 4)
    row_off = jnp.arange(0, (H - 1) * W, W, dtype=jnp.int32)
    quads = (row_off[:, None, None] + row_faces[None]).reshape(-1, 4)
    # triangulate (no backslash): quad [a,b,c,d] -> [a,b,c], [a,c,d]
    tris = jnp.stack([quads[:, jnp.array([0, 1, 2])],
                      quads[:, jnp.array([0, 2, 3])]], axis=1).reshape(-1, 3)
    return tris.astype(jnp.int32)


def _image_uv(H, W):
    u = (jnp.arange(W, dtype=jnp.float32) + 0.5) / W
    v = (jnp.arange(H, dtype=jnp.float32) + 0.5) / H
    uu, vv = jnp.meshgrid(u, v)
    return jnp.stack([uu, vv], axis=-1)                   # (H, W, 2)


@functools.partial(jax.jit, static_argnames=("row_block",))
def moge_mesh_forward(image_ch_last, depth, mask, intrinsics, row_block=None):
    B, H, W, C = image_ch_last.shape
    assert C == 3
    img_dtype = image_ch_last.dtype

    mask_b = mask.astype(bool)
    depth32 = depth.astype(jnp.float32)
    # per-image largest valid depth (cheap XLA reduction keeps the kernel row-tileable)
    largest = jnp.max(jnp.where(mask_b, depth32, 0.0), axis=(1, 2)).astype(jnp.float32)
    # single f32 map carrying both depth and mask: +inf marks invalid pixels
    a_map = jnp.where(mask_b, depth32, jnp.inf)
    kinv_flat = jnp.linalg.inv(intrinsics.astype(jnp.float32)).reshape(B * 9)

    th, n_rt, hp, wp = _pick_tiling(H, W, row_block)
    if hp != H or wp != W:
        a_map = jnp.pad(a_map, ((0, 0), (0, hp - H), (0, wp - W)),
                        constant_values=jnp.inf)

    out5 = _run_pixel_kernel(a_map, kinv_flat, largest,
                             th=th, n_rt=n_rt, h_real=H, w_real=W)

    # crop + split (slices fuse into the consumers below)
    points = jnp.transpose(out5[:, 0:3, :H, :W], (0, 2, 3, 1))       # (B, H, W, 3) f32
    alpha = out5[:, 3, :H, :W].astype(img_dtype)                     # (B, H, W)
    edge = out5[:, 4, :H, :W] > 0.5                                  # (B, H, W) bool

    # edge recolor + alpha concat: elementwise, done natively channel-last (no transpose)
    inval = jnp.asarray(INVALID_MESH_COLOR, img_dtype)
    rgb = jnp.where(edge[..., None], inval, image_ch_last)
    image_alpha = jnp.concatenate([rgb, alpha[..., None]], axis=-1)  # (B, H, W, 4)

    # K from normalized intrinsics
    K = jnp.zeros_like(intrinsics)
    K = K.at[:, 0, :].set(intrinsics[:, 0, :] * W)
    K = K.at[:, 1, :].set(intrinsics[:, 1, :] * H)
    K = K.at[:, 2, 2].set(1.0)

    # mesh tensors (image_mesh with mask=None, tri=True)
    faces = _build_faces(H, W)
    faces_list = jnp.broadcast_to(faces[None], (B,) + faces.shape)
    verts_list = points.reshape(B, H * W, 3)
    uv = _image_uv(H, W).reshape(-1, 2)
    uv = uv.at[:, 1].set(1.0 - uv[:, 1])                  # vertex_uvs[:, 1] = 1 - v
    vert_uv_list = jnp.broadcast_to(uv[None], (B,) + uv.shape)

    # TODO(synk): pytorch3d Meshes / TexturesUV have no JAX equivalent; return tensors.
    mesh = {"verts": verts_list, "faces": faces_list, "verts_uvs": vert_uv_list,
            "faces_uvs": faces_list, "maps": image_alpha}
    return K, mesh, points


# ---------------------------------------------------------------------------
# Synthetic stand-in for the MoGe backbone inference (deterministic).
# ---------------------------------------------------------------------------
def synthetic_moge_infer(image_ch_last):
    B, H, W, _ = image_ch_last.shape
    gray = image_ch_last.astype(jnp.float32).mean(axis=-1)               # (B, H, W)
    ii = jnp.arange(H, dtype=jnp.float32)[None, :, None]
    jj = jnp.arange(W, dtype=jnp.float32)[None, None, :]
    step = (jnp.floor(ii / 4.0) + jnp.floor(jj / 4.0)) % 2.0             # blocky -> edges
    depth = (1.0 + 0.25 * gray + 2.0 * step).astype(jnp.float32)
    cy, cx = (H - 1) / 2.0, (W - 1) / 2.0
    r2 = (ii - cy) ** 2 + (jj - cx) ** 2
    mask = jnp.broadcast_to(r2 < (0.45 * min(H, W)) ** 2, (B, H, W))
    base_K = jnp.array([[0.6, 0.0, 0.5],
                        [0.0, 0.7, 0.5],
                        [0.0, 0.0, 1.0]], dtype=jnp.float32)
    scales = 1.0 + 0.05 * jnp.arange(B, dtype=jnp.float32)
    intrinsics = jnp.broadcast_to(base_K[None], (B, 3, 3))
    intrinsics = intrinsics.at[:, 0, 0].mul(scales).at[:, 1, 1].mul(scales)
    return depth, mask, intrinsics


# ---------------------------------------------------------------------------
# Pure-JAX reference of the pixel math (original division-based semantics).
# ---------------------------------------------------------------------------
def _reference_pixels(image, depth, mask, intrinsics):
    B, H, W, _ = image.shape
    largest = jnp.max(jnp.where(mask, depth, 0.0), axis=(1, 2), keepdims=True)
    depth_f = jnp.where(mask, depth, largest)
    uvw = jnp.concatenate([_image_uv(H, W), jnp.ones((H, W, 1), jnp.float32)], -1)
    kinv = jnp.linalg.inv(intrinsics)
    pts = jnp.einsum("bij,hwj->bhwi", kinv, uvw,
                     precision=jax.lax.Precision.HIGHEST) * depth_f[..., None]

    def pool(x):
        xp = jnp.pad(x, ((0, 0), (1, 1), (1, 1)), constant_values=-jnp.inf)
        out = jnp.full_like(x, -jnp.inf)
        for di in range(3):
            for dj in range(3):
                out = jnp.maximum(out, xp[:, di:di + H, dj:dj + W])
        return out

    diff = pool(jnp.where(mask, depth_f, jnp.inf)) + pool(jnp.where(mask, -depth_f, -jnp.inf))
    ratio = diff / depth_f
    big = jnp.finfo(jnp.float32).max
    ratio = jnp.where(jnp.isnan(ratio), 0.0, ratio)
    ratio = jnp.where(ratio == jnp.inf, big, ratio)
    ratio = jnp.where(ratio == -jnp.inf, -big, ratio)
    edge = ratio > DEPTH_EDGE_RTOL

    color = jnp.array(INVALID_MESH_COLOR, jnp.float32)
    img = jnp.where(edge[..., None], color, image)
    alpha = jnp.full((B, H, W), VALID_ALPHA, jnp.float32)
    alpha = jnp.where(jnp.logical_not(mask), BACKGROUND_ALPHA, alpha)
    alpha = jnp.where(edge | (depth_f < 0.0), INVALID_ALPHA, alpha)
    rgba = jnp.concatenate([img, alpha[..., None]], axis=-1)
    return pts, rgba


if __name__ == "__main__":
    key = jax.random.PRNGKey(0)
    k1, k2 = jax.random.split(key)

    # --- Case 1: aligned shapes; row_block=8 -> 2 row tiles per image (halo path)
    B, H, W = 2, 16, 128
    image = jax.random.uniform(k1, (B, H, W, 3), dtype=jnp.float32)
    depth, mask, intrinsics = synthetic_moge_infer(image)
    K, mesh, points = moge_mesh_forward(image, depth, mask, intrinsics, row_block=8)
    jax.block_until_ready((K, mesh, points))

    pts_ref, rgba_ref = _reference_pixels(image, depth, mask, intrinsics)
    assert points.shape == (B, H, W, 3)
    assert mesh["maps"].shape == (B, H, W, 4)
    assert mesh["faces"].shape == (B, (H - 1) * (W - 1) * 2, 3)
    assert mesh["verts"].shape == (B, H * W, 3)
    assert K.shape == (B, 3, 3)
    assert jnp.allclose(points, pts_ref, atol=1e-5, rtol=1e-5)
    assert jnp.allclose(mesh["maps"], rgba_ref, atol=1e-5, rtol=1e-5)

    # --- Case 2: unaligned H/W (H=20 -> 24 pad, W=96 -> 128 pad), auto tiling path
    B2, H2, W2 = 1, 20, 96
    image2 = jax.random.uniform(k2, (B2, H2, W2, 3), dtype=jnp.float32)
    depth2, mask2, intrinsics2 = synthetic_moge_infer(image2)
    K2, mesh2, points2 = moge_mesh_forward(image2, depth2, mask2, intrinsics2)
    jax.block_until_ready((K2, mesh2, points2))

    pts2_ref, rgba2_ref = _reference_pixels(image2, depth2, mask2, intrinsics2)
    assert points2.shape == (B2, H2, W2, 3)
    assert mesh2["maps"].shape == (B2, H2, W2, 4)
    assert jnp.allclose(points2, pts2_ref, atol=1e-5, rtol=1e-5)
    assert jnp.allclose(mesh2["maps"], rgba2_ref, atol=1e-5, rtol=1e-5)

    print("KERNEL_OK")
</pallas_src>

<mosaic_0001>
module attributes {stable_mosaic.version = 11 : i64} {
  func.func @_moge_mesh_kernel(%arg0: i32, %arg1: i32, %arg2: memref<18xf32, #tpu.memory_space<smem>>, %arg3: memref<2xf32, #tpu.memory_space<smem>>, %arg4: memref<1x8x128xf32, #tpu.memory_space<vmem>>, %arg5: memref<1x8x128xf32, #tpu.memory_space<vmem>>, %arg6: memref<1x8x128xf32, #tpu.memory_space<vmem>>, %arg7: memref<1x5x8x128xf32, #tpu.memory_space<vmem>>) attributes {dimension_semantics = [#tpu.dimension_semantics<parallel>, #tpu.dimension_semantics<parallel>], iteration_bounds = array<i64: 2, 2>, scalar_prefetch = 0 : i64, scratch_operands = 0 : i64, tpu.core_type = #tpu.core_type<tc>, window_params = [{transform_indices = @transform_0, window_bounds = array<i64: 18>}, {transform_indices = @transform_1, window_bounds = array<i64: 2>}, {transform_indices = @transform_2, window_bounds = array<i64: 1, 8, 128>}, {transform_indices = @transform_3, window_bounds = array<i64: 1, 8, 128>}, {transform_indices = @transform_4, window_bounds = array<i64: 1, 8, 128>}, {transform_indices = @transform_5, window_bounds = array<i64: 1, 5, 8, 128>}]} {
    %c8_i32 = arith.constant 8 : i32
    %0 = arith.muli %arg1, %c8_i32 : i32
    %c0 = arith.constant 0 : index
    %c0_0 = arith.constant 0 : index
    %c0_1 = arith.constant 0 : index
    %1 = vector.load %arg4[%c0, %c0_0, %c0_1] : memref<1x8x128xf32, #tpu.memory_space<vmem>>, vector<1x8x128xf32>
    %2 = vector.shape_cast %1 : vector<1x8x128xf32> to vector<8x128xf32>
    %c0_2 = arith.constant 0 : index
    %c0_3 = arith.constant 0 : index
    %c0_4 = arith.constant 0 : index
    %3 = vector.load %arg5[%c0_2, %c0_3, %c0_4] : memref<1x8x128xf32, #tpu.memory_space<vmem>>, vector<1x8x128xf32>
    %4 = vector.shape_cast %3 : vector<1x8x128xf32> to vector<8x128xf32>
    %5 = vector.extract_strided_slice %4 {offsets = [7, 0], sizes = [1, 128], strides = [1, 1]} : vector<8x128xf32> to vector<1x128xf32>
    %c0_5 = arith.constant 0 : index
    %c0_6 = arith.constant 0 : index
    %c0_7 = arith.constant 0 : index
    %6 = vector.load %arg6[%c0_5, %c0_6, %c0_7] : memref<1x8x128xf32, #tpu.memory_space<vmem>>, vector<1x8x128xf32>
    %7 = vector.shape_cast %6 : vector<1x8x128xf32> to vector<8x128xf32>
    %8 = vector.extract_strided_slice %7 {offsets = [0, 0], sizes = [1, 128], strides = [1, 1]} : vector<8x128xf32> to vector<1x128xf32>
    %9 = tpu.iota {dimensions = array<i32: 0>} : vector<8x1xi32>
    %10 = tpu.iota {dimensions = array<i32: 1>} : vector<1x128xi32>
    %11 = vector.broadcast %0 : i32 to vector<8x1xi32>
    %12 = arith.addi %9, %11 : vector<8x1xi32>
    %c1_i32 = arith.constant 1 : i32
    %13 = tpu.dynamic_rotate %2 by %c1_i32 dim 0 : vector<8x128xf32>, i32 -> vector<8x128xf32>
    %c7_i32 = arith.constant 7 : i32
    %14 = tpu.dynamic_rotate %2 by %c7_i32 dim 0 : vector<8x128xf32>, i32 -> vector<8x128xf32>
    %c0_i32 = arith.constant 0 : i32
    %15 = vector.broadcast %c0_i32 : i32 to vector<8x1xi32>
    %16 = arith.cmpi eq, %9, %15 : vector<8x1xi32>
    %c7_i32_8 = arith.constant 7 : i32
    %17 = vector.broadcast %c7_i32_8 : i32 to vector<8x1xi32>
    %18 = arith.cmpi eq, %9, %17 : vector<8x1xi32>
    %c0_i32_9 = arith.constant 0 : i32
    %19 = arith.cmpi sgt, %0, %c0_i32_9 : i32
    %cst = arith.constant 0xFF800000 : f32
    %20 = vector.broadcast %cst : f32 to vector<1x128xf32>
    %21 = arith.select %19, %5, %20 : vector<1x128xf32>
    %cst_10 = arith.constant 0x7F800000 : f32
    %22 = vector.broadcast %cst_10 : f32 to vector<1x128xf32>
    %23 = arith.select %19, %5, %22 : vector<1x128xf32>
    %c15_i32 = arith.constant 15 : i32
    %24 = vector.broadcast %c15_i32 : i32 to vector<8x1xi32>
    %25 = arith.cmpi sge, %12, %24 : vector<8x1xi32>
    %26 = vector.shape_cast %18 : vector<8x1xi1> to vector<8x1xi1>
    %27 = vector.broadcast %26 : vector<8x1xi1> to vector<8x128xi1>
    %28 = vector.shape_cast %8 : vector<1x128xf32> to vector<1x128xf32>
    %29 = vector.broadcast %28 : vector<1x128xf32> to vector<8x128xf32>
    %30 = arith.select %27, %29, %14 : vector<8x128xi1>, vector<8x128xf32>
    %31 = vector.shape_cast %16 : vector<8x1xi1> to vector<8x1xi1>
    %32 = vector.broadcast %31 : vector<8x1xi1> to vector<8x128xi1>
    %33 = vector.shape_cast %21 : vector<1x128xf32> to vector<1x128xf32>
    %34 = vector.broadcast %33 : vector<1x128xf32> to vector<8x128xf32>
    %35 = arith.select %32, %34, %13 : vector<8x128xi1>, vector<8x128xf32>
    %36 = vector.shape_cast %16 : vector<8x1xi1> to vector<8x1xi1>
    %37 = vector.broadcast %36 : vector<8x1xi1> to vector<8x128xi1>
    %38 = vector.shape_cast %23 : vector<1x128xf32> to vector<1x128xf32>
    %39 = vector.broadcast %38 : vector<1x128xf32> to vector<8x128xf32>
    %40 = arith.select %37, %39, %13 : vector<8x128xi1>, vector<8x128xf32>
    %cst_11 = arith.constant 0xFF800000 : f32
    %41 = vector.shape_cast %25 : vector<8x1xi1> to vector<8x1xi1>
    %42 = vector.broadcast %41 : vector<8x1xi1> to vector<8x128xi1>
    %43 = vector.broadcast %cst_11 : f32 to vector<8x128xf32>
    %44 = arith.select %42, %43, %30 : vector<8x128xi1>, vector<8x128xf32>
    %cst_12 = arith.constant 0x7F800000 : f32
    %45 = vector.shape_cast %25 : vector<8x1xi1> to vector<8x1xi1>
    %46 = vector.broadcast %45 : vector<8x1xi1> to vector<8x128xi1>
    %47 = vector.broadcast %cst_12 : f32 to vector<8x128xf32>
    %48 = arith.select %46, %47, %30 : vector<8x128xi1>, vector<8x128xf32>
    %49 = arith.maximumf %2, %35 : vector<8x128xf32>
    %50 = arith.maximumf %49, %44 : vector<8x128xf32>
    %51 = arith.minimumf %2, %40 : vector<8x128xf32>
    %52 = arith.minimumf %51, %48 : vector<8x128xf32>
    %c0_i32_13 = arith.constant 0 : i32
    %53 = vector.broadcast %c0_i32_13 : i32 to vector<1x128xi32>
    %54 = arith.cmpi eq, %10, %53 : vector<1x128xi32>
    %c127_i32 = arith.constant 127 : i32
    %55 = vector.broadcast %c127_i32 : i32 to vector<1x128xi32>
    %56 = arith.cmpi eq, %10, %55 : vector<1x128xi32>
    %c1_i32_14 = arith.constant 1 : i32
    %57 = tpu.dynamic_rotate %50 by %c1_i32_14 dim 1 : vector<8x128xf32>, i32 -> vector<8x128xf32>
    %cst_15 = arith.constant 0xFF800000 : f32
    %58 = vector.shape_cast %54 : vector<1x128xi1> to vector<1x128xi1>
    %59 = vector.broadcast %58 : vector<1x128xi1> to vector<8x128xi1>
    %60 = vector.broadcast %cst_15 : f32 to vector<8x128xf32>
    %61 = arith.select %59, %60, %57 : vector<8x128xi1>, vector<8x128xf32>
    %c127_i32_16 = arith.constant 127 : i32
    %62 = tpu.dynamic_rotate %50 by %c127_i32_16 dim 1 : vector<8x128xf32>, i32 -> vector<8x128xf32>
    %cst_17 = arith.constant 0xFF800000 : f32
    %63 = vector.shape_cast %56 : vector<1x128xi1> to vector<1x128xi1>
    %64 = vector.broadcast %63 : vector<1x128xi1> to vector<8x128xi1>
    %65 = vector.broadcast %cst_17 : f32 to vector<8x128xf32>
    %66 = arith.select %64, %65, %62 : vector<8x128xi1>, vector<8x128xf32>
    %c1_i32_18 = arith.constant 1 : i32
    %67 = tpu.dynamic_rotate %52 by %c1_i32_18 dim 1 : vector<8x128xf32>, i32 -> vector<8x128xf32>
    %cst_19 = arith.constant 0x7F800000 : f32
    %68 = vector.shape_cast %54 : vector<1x128xi1> to vector<1x128xi1>
    %69 = vector.broadcast %68 : vector<1x128xi1> to vector<8x128xi1>
    %70 = vector.broadcast %cst_19 : f32 to vector<8x128xf32>
    %71 = arith.select %69, %70, %67 : vector<8x128xi1>, vector<8x128xf32>
    %c127_i32_20 = arith.constant 127 : i32
    %72 = tpu.dynamic_rotate %52 by %c127_i32_20 dim 1 : vector<8x128xf32>, i32 -> vector<8x128xf32>
    %cst_21 = arith.constant 0x7F800000 : f32
    %73 = vector.shape_cast %56 : vector<1x128xi1> to vector<1x128xi1>
    %74 = vector.broadcast %73 : vector<1x128xi1> to vector<8x128xi1>
    %75 = vector.broadcast %cst_21 : f32 to vector<8x128xf32>
    %76 = arith.select %74, %75, %72 : vector<8x128xi1>, vector<8x128xf32>
    %77 = arith.maximumf %50, %61 : vector<8x128xf32>
    %78 = arith.maximumf %77, %66 : vector<8x128xf32>
    %79 = arith.minimumf %52, %71 : vector<8x128xf32>
    %80 = arith.minimumf %79, %76 : vector<8x128xf32>
    %81 = arith.subf %78, %80 : vector<8x128xf32>
    %82 = arith.index_cast %arg0 : i32 to index
    %83 = memref.load %arg3[%82] : memref<2xf32, #tpu.memory_space<smem>>
    %cst_22 = arith.constant 0x7F800000 : f32
    %84 = vector.broadcast %cst_22 : f32 to vector<8x128xf32>
    %85 = arith.cmpf olt, %2, %84 : vector<8x128xf32>
    %86 = vector.broadcast %83 : f32 to vector<8x128xf32>
    %87 = arith.select %85, %2, %86 : vector<8x128xi1>, vector<8x128xf32>
    %cst_23 = arith.constant 5.000000e-02 : f32
    %88 = vector.broadcast %cst_23 : f32 to vector<8x128xf32>
    %89 = arith.mulf %88, %87 : vector<8x128xf32>
    %90 = arith.cmpf ogt, %81, %89 : vector<8x128xf32>
    %cst_24 = arith.constant 0.000000e+00 : f32
    %91 = vector.broadcast %cst_24 : f32 to vector<8x128xf32>
    %92 = arith.cmpf oge, %87, %91 : vector<8x128xf32>
    %93 = arith.andi %90, %92 : vector<8x128xi1>
    %c9_i32 = arith.constant 9 : i32
    %94 = arith.muli %arg0, %c9_i32 : i32
    %c0_i32_25 = arith.constant 0 : i32
    %95 = arith.addi %94, %c0_i32_25 : i32
    %96 = arith.index_cast %95 : i32 to index
    %97 = memref.load %arg2[%96] : memref<18xf32, #tpu.memory_space<smem>>
    %c1_i32_26 = arith.constant 1 : i32
    %98 = arith.addi %94, %c1_i32_26 : i32
    %99 = arith.index_cast %98 : i32 to index
    %100 = memref.load %arg2[%99] : memref<18xf32, #tpu.memory_space<smem>>
    %c2_i32 = arith.constant 2 : i32
    %101 = arith.addi %94, %c2_i32 : i32
    %102 = arith.index_cast %101 : i32 to index
    %103 = memref.load %arg2[%102] : memref<18xf32, #tpu.memory_space<smem>>
    %c3_i32 = arith.constant 3 : i32
    %104 = arith.addi %94, %c3_i32 : i32
    %105 = arith.index_cast %104 : i32 to index
    %106 = memref.load %arg2[%105] : memref<18xf32, #tpu.memory_space<smem>>
    %c4_i32 = arith.constant 4 : i32
    %107 = arith.addi %94, %c4_i32 : i32
    %108 = arith.index_cast %107 : i32 to index
    %109 = memref.load %arg2[%108] : memref<18xf32, #tpu.memory_space<smem>>
    %c5_i32 = arith.constant 5 : i32
    %110 = arith.addi %94, %c5_i32 : i32
    %111 = arith.index_cast %110 : i32 to index
    %112 = memref.load %arg2[%111] : memref<18xf32, #tpu.memory_space<smem>>
    %c6_i32 = arith.constant 6 : i32
    %113 = arith.addi %94, %c6_i32 : i32
    %114 = arith.index_cast %113 : i32 to index
    %115 = memref.load %arg2[%114] : memref<18xf32, #tpu.memory_space<smem>>
    %c7_i32_27 = arith.constant 7 : i32
    %116 = arith.addi %94, %c7_i32_27 : i32
    %117 = arith.index_cast %116 : i32 to index
    %118 = memref.load %arg2[%117] : memref<18xf32, #tpu.memory_space<smem>>
    %c8_i32_28 = arith.constant 8 : i32
    %119 = arith.addi %94, %c8_i32_28 : i32
    %120 = arith.index_cast %119 : i32 to index
    %121 = memref.load %arg2[%120] : memref<18xf32, #tpu.memory_space<smem>>
    %122 = arith.sitofp %10 : vector<1x128xi32> to vector<1x128xf32>
    %cst_29 = arith.constant 5.000000e-01 : f32
    %123 = vector.broadcast %cst_29 : f32 to vector<1x128xf32>
    %124 = arith.addf %122, %123 : vector<1x128xf32>
    %cst_30 = arith.constant 7.812500e-03 : f32
    %125 = vector.broadcast %cst_30 : f32 to vector<1x128xf32>
    %126 = arith.mulf %124, %125 : vector<1x128xf32>
    %127 = arith.sitofp %12 : vector<8x1xi32> to vector<8x1xf32>
    %cst_31 = arith.constant 5.000000e-01 : f32
    %128 = vector.broadcast %cst_31 : f32 to vector<8x1xf32>
    %129 = arith.addf %127, %128 : vector<8x1xf32>
    %cst_32 = arith.constant 6.250000e-02 : f32
    %130 = vector.broadcast %cst_32 : f32 to vector<8x1xf32>
    %131 = arith.mulf %129, %130 : vector<8x1xf32>
    %132 = vector.broadcast %97 : f32 to vector<1x128xf32>
    %133 = arith.mulf %132, %126 : vector<1x128xf32>
    %134 = vector.broadcast %100 : f32 to vector<8x1xf32>
    %135 = arith.mulf %134, %131 : vector<8x1xf32>
    %136 = vector.broadcast %133 : vector<1x128xf32> to vector<8x128xf32>
    %137 = vector.broadcast %135 : vector<8x1xf32> to vector<8x128xf32>
    %138 = arith.addf %136, %137 : vector<8x128xf32>
    %139 = vector.broadcast %103 : f32 to vector<8x128xf32>
    %140 = arith.addf %138, %139 : vector<8x128xf32>
    %141 = arith.mulf %140, %87 : vector<8x128xf32>
    %c0_33 = arith.constant 0 : index
    %c0_34 = arith.constant 0 : index
    %c0_35 = arith.constant 0 : index
    %c0_36 = arith.constant 0 : index
    %142 = vector.load %arg7[%c0_33, %c0_34, %c0_35, %c0_36] : memref<1x5x8x128xf32, #tpu.memory_space<vmem>>, vector<1x1x8x128xf32>
    %143 = vector.shape_cast %142 : vector<1x1x8x128xf32> to vector<8x128xf32>
    %144 = vector.shape_cast %141 : vector<8x128xf32> to vector<1x1x8x128xf32>
    tpu.vector_store %arg7[%c0_33, %c0_34, %c0_35, %c0_36], %144 {strides = array<i32>} : memref<1x5x8x128xf32, #tpu.memory_space<vmem>>, vector<1x1x8x128xf32>,
    %145 = vector.broadcast %106 : f32 to vector<1x128xf32>
    %146 = arith.mulf %145, %126 : vector<1x128xf32>
    %147 = vector.broadcast %109 : f32 to vector<8x1xf32>
    %148 = arith.mulf %147, %131 : vector<8x1xf32>
    %149 = vector.broadcast %146 : vector<1x128xf32> to vector<8x128xf32>
    %150 = vector.broadcast %148 : vector<8x1xf32> to vector<8x128xf32>
    %151 = arith.addf %149, %150 : vector<8x128xf32>
    %152 = vector.broadcast %112 : f32 to vector<8x128xf32>
    %153 = arith.addf %151, %152 : vector<8x128xf32>
    %154 = arith.mulf %153, %87 : vector<8x128xf32>
    %c0_37 = arith.constant 0 : index
    %c1 = arith.constant 1 : index
    %c0_38 = arith.constant 0 : index
    %c0_39 = arith.constant 0 : index
    %155 = vector.load %arg7[%c0_37, %c1, %c0_38, %c0_39] : memref<1x5x8x128xf32, #tpu.memory_space<vmem>>, vector<1x1x8x128xf32>
    %156 = vector.shape_cast %155 : vector<1x1x8x128xf32> to vector<8x128xf32>
    %157 = vector.shape_cast %154 : vector<8x128xf32> to vector<1x1x8x128xf32>
    tpu.vector_store %arg7[%c0_37, %c1, %c0_38, %c0_39], %157 {strides = array<i32>} : memref<1x5x8x128xf32, #tpu.memory_space<vmem>>, vector<1x1x8x128xf32>,
    %158 = vector.broadcast %115 : f32 to vector<1x128xf32>
    %159 = arith.mulf %158, %126 : vector<1x128xf32>
    %160 = vector.broadcast %118 : f32 to vector<8x1xf32>
    %161 = arith.mulf %160, %131 : vector<8x1xf32>
    %162 = vector.broadcast %159 : vector<1x128xf32> to vector<8x128xf32>
    %163 = vector.broadcast %161 : vector<8x1xf32> to vector<8x128xf32>
    %164 = arith.addf %162, %163 : vector<8x128xf32>
    %165 = vector.broadcast %121 : f32 to vector<8x128xf32>
    %166 = arith.addf %164, %165 : vector<8x128xf32>
    %167 = arith.mulf %166, %87 : vector<8x128xf32>
    %c0_40 = arith.constant 0 : index
    %c2 = arith.constant 2 : index
    %c0_41 = arith.constant 0 : index
    %c0_42 = arith.constant 0 : index
    %168 = vector.load %arg7[%c0_40, %c2, %c0_41, %c0_42] : memref<1x5x8x128xf32, #tpu.memory_space<vmem>>, vector<1x1x8x128xf32>
    %169 = vector.shape_cast %168 : vector<1x1x8x128xf32> to vector<8x128xf32>
    %170 = vector.shape_cast %167 : vector<8x128xf32> to vector<1x1x8x128xf32>
    tpu.vector_store %arg7[%c0_40, %c2, %c0_41, %c0_42], %170 {strides = array<i32>} : memref<1x5x8x128xf32, #tpu.memory_space<vmem>>, vector<1x1x8x128xf32>,
    %cst_43 = arith.constant 1.000000e+00 : f32
    %cst_44 = arith.constant 1.000000e+00 : f32
    %171 = vector.broadcast %cst_43 : f32 to vector<8x128xf32>
    %172 = vector.broadcast %cst_44 : f32 to vector<8x128xf32>
    %173 = arith.select %85, %171, %172 : vector<8x128xi1>, vector<8x128xf32>
    %cst_45 = arith.constant 0.000000e+00 : f32
    %174 = vector.broadcast %cst_45 : f32 to vector<8x128xf32>
    %175 = arith.cmpf olt, %87, %174 : vector<8x128xf32>
    %176 = arith.ori %93, %175 : vector<8x128xi1>
    %cst_46 = arith.constant -1.000000e+00 : f32
    %177 = vector.broadcast %cst_46 : f32 to vector<8x128xf32>
    %178 = arith.select %176, %177, %173 : vector<8x128xi1>, vector<8x128xf32>
    %c0_47 = arith.constant 0 : index
    %c3 = arith.constant 3 : index
    %c0_48 = arith.constant 0 : index
    %c0_49 = arith.constant 0 : index
    %179 = vector.load %arg7[%c0_47, %c3, %c0_48, %c0_49] : memref<1x5x8x128xf32, #tpu.memory_space<vmem>>, vector<1x1x8x128xf32>
    %180 = vector.shape_cast %179 : vector<1x1x8x128xf32> to vector<8x128xf32>
    %181 = vector.shape_cast %178 : vector<8x128xf32> to vector<1x1x8x128xf32>
    tpu.vector_store %arg7[%c0_47, %c3, %c0_48, %c0_49], %181 {strides = array<i32>} : memref<1x5x8x128xf32, #tpu.memory_space<vmem>>, vector<1x1x8x128xf32>,
    %182 = arith.extui %93 : vector<8x128xi1> to vector<8x128xi32>
    %183 = arith.sitofp %182 : vector<8x128xi32> to vector<8x128xf32>
    %c0_50 = arith.constant 0 : index
    %c4 = arith.constant 4 : index
    %c0_51 = arith.constant 0 : index
    %c0_52 = arith.constant 0 : index
    %184 = vector.load %arg7[%c0_50, %c4, %c0_51, %c0_52] : memref<1x5x8x128xf32, #tpu.memory_space<vmem>>, vector<1x1x8x128xf32>
    %185 = vector.shape_cast %184 : vector<1x1x8x128xf32> to vector<8x128xf32>
    %186 = vector.shape_cast %183 : vector<8x128xf32> to vector<1x1x8x128xf32>
    tpu.vector_store %arg7[%c0_50, %c4, %c0_51, %c0_52], %186 {strides = array<i32>} : memref<1x5x8x128xf32, #tpu.memory_space<vmem>>, vector<1x1x8x128xf32>,
    return
  }
  func.func @transform_0(%arg0: i32, %arg1: i32) -> i32 {
    %c0_i32 = arith.constant 0 : i32
    %c0_i32_0 = arith.constant 0 : i32
    return %c0_i32 : i32
  }
  func.func @transform_1(%arg0: i32, %arg1: i32) -> i32 {
    %c0_i32 = arith.constant 0 : i32
    %c0_i32_0 = arith.constant 0 : i32
    return %c0_i32 : i32
  }
  func.func @transform_2(%arg0: i32, %arg1: i32) -> (i32, i32, i32) {
    %c0_i32 = arith.constant 0 : i32
    %c0_i32_0 = arith.constant 0 : i32
    return %arg0, %arg1, %c0_i32 : i32, i32, i32
  }
  func.func @transform_3(%arg0: i32, %arg1: i32) -> (i32, i32, i32) {
    %c1_i32 = arith.constant 1 : i32
    %0 = arith.muli %arg1, %c1_i32 : i32
    %c1_i32_0 = arith.constant 1 : i32
    %1 = arith.subi %0, %c1_i32_0 : i32
    %c0_i32 = arith.constant 0 : i32
    %2 = arith.maxsi %1, %c0_i32 : i32
    %c0_i32_1 = arith.constant 0 : i32
    %c0_i32_2 = arith.constant 0 : i32
    return %arg0, %2, %c0_i32_1 : i32, i32, i32
  }
  func.func @transform_4(%arg0: i32, %arg1: i32) -> (i32, i32, i32) {
    %c1_i32 = arith.constant 1 : i32
    %0 = arith.addi %arg1, %c1_i32 : i32
    %c1_i32_0 = arith.constant 1 : i32
    %1 = arith.muli %0, %c1_i32_0 : i32
    %c1_i32_1 = arith.constant 1 : i32
    %2 = arith.minsi %1, %c1_i32_1 : i32
    %c0_i32 = arith.constant 0 : i32
    %c0_i32_2 = arith.constant 0 : i32
    return %arg0, %2, %c0_i32 : i32, i32, i32
  }
  func.func @transform_5(%arg0: i32, %arg1: i32) -> (i32, i32, i32, i32) {
    %c0_i32 = arith.constant 0 : i32
    %c0_i32_0 = arith.constant 0 : i32
    %c0_i32_1 = arith.constant 0 : i32
    return %arg0, %c0_i32, %arg1, %c0_i32_0 : i32, i32, i32, i32
  }
}

</mosaic_0001>

<bundles_post_ra>
// kernel: custom-call.11
= control target key start
LH: loop header
LB: loop body
LE: loop exit
PB: predicated region body
PF: predicated region fallthrough
CT: control target
= control target key end

     0   :  { %5 = vsyncpa [#allocation6], 0  ;;  %s896_s0 = inlined_call_operand.vmem [shape: f32[2,3,3], index: 0, kind: input, shape index: {}]   ;;  %s897_s1 = inlined_call_operand.vmem [shape: f32[2,3,3], index: 1, kind: output, shape index: {0}]   ;;  %s898_s2 = inlined_call_operand.hbm [shape: s32[2,3], index: 2, kind: output, shape index: {1}]   ;;  %s899_s3 = inlined_call_operand.vmem [shape: s32[2,3], index: 3, kind: output, shape index: {2}]  }
   0x1   :  { %7 = vsyncpa [#allocation6 + $0x1], 0  ;;  %s715_s12 = smov 0   ;;  %s717_s13 = smov 0  }
   0x2   :  { %s719_s14 = smov 0   ;;  %s721_s15 = smov 0  }
   0x3 LB: > { %s736_s16 = sadd.s32 4294967295, %s687_s15   ;;  %s550_s17 = sadd.s32 4294967294, %s687_s15   ;;  %s687_s15 = sphi %s721_s15, %s907_s15   ;;  %s683_s14 = sphi %s719_s14, %s906_s14   ;;  %s679_s13 = sphi %s717_s13, %s905_s13   ;;  %s675_s12 = sphi %s715_s12, %s904_s12  }
   0x4   : > { %s740_s18 = sadd.s32 1, %s687_s15   ;;  %s17_s19 = sshrl.u32 %s687_s15, 3 }
   0x5   : > { %s18_s20 = sshrl.u32 %s740_s18, 3  ;;  %s22_s21 = sadd.s32 1, %s683_s14 }
   0x6   : > { %s19_s22 = ssub.s32 %s17_s19, %s18_s20  ;;  %p32_p0 = scmp.ne.s32.totalorder %s683_s14, %s679_s13 }
   0x7   : > { %p20_p1 = scmp.eq.s32.totalorder %s19_s22, 0  ;;  %p33_p2 = scmp.eq.s32.totalorder %s736_s16, 1 }
   0x8   : > { %p38_p3 = scmp.ne.s32.totalorder %s679_s13, %s675_s12  ;;  %p39_p4 = scmp.eq.s32.totalorder %s550_s17, 1 }
   0x9   : > { %s751_s23 = scalar_select %p20_p1, %s683_s14, %s22_s21  }
   0xa   : > { %p753_p5 = por %p33_p2, %p32_p0  ;;  %p757_p6 = por %p39_p4, %p38_p3 }
   0xb   : > { %p552_p7 = scmp.ge.s32.totalorder %s687_s15, 2 }
   0xc   : > { %s85_s26 = sand.u32 (!%p552_p7), 1, %s687_s15   ;;  %s554_s27 = sshll.u32 (!%p552_p7), %s687_s15, 2 }
   0xd   : > { %83 = sbr.rel (%p552_p7) target bundleno = 20 (0x14), region = 16  ;;  %s553_s28 = sshll.u32 (!%p552_p7), %s85_s26, 2 }
   0xe   : > { %s89_s4 = scalar_lea.vmem (!%p552_p7), %s896_s0, %s554_s27  ;;  %s87_s5 = scalar_lea.vmem (!%p552_p7), [#allocation1], %s553_s28 }
   0xf   : > { %v105_v0 = vld [vmem:[%s89_s4] sm:$0xf] (!%p552_p7) }
  0x10   : > { %106 = vst [vmem:[%s87_s5] sm:$0xf] (!%p552_p7), %v105_v0 }
  0x14 PF: > { %p555_p8 = scmp.ge.s32.totalorder %s687_s15, 1  ;;  %p122_p9 = scmp.lt.s32.totalorder %s687_s15, 3 }
  0x16   : > { %p123_p10 = pnand %p555_p8, %p122_p9 }
  0x18   : > { %126 = sbr.rel (%p123_p10) target bundleno = 451 (0x1c3), region = 50 }
  0x1f   : > { %s133_s6 = sand.u32 1, %s736_s16   ;;  %s144_s7 = sand.u32 1, %s679_s13   ;;  %v166_v1 = vlaneseq  ;;  %v693_v4 = vmov 0  }
  0x20   : > { %s773_s8 = sshll.u32 %s133_s6, 2  ;;  %s777_s9 = sshll.u32 %s144_s7, 1 }
  0x21   : > { %v780_v2 = vshrl.u32 %v166_v1, 7  ;;  %s135_s10 = scalar_lea.vmem [#allocation1], %s773_s8  ;;  %s161_s11 = sand.u32 7, %s736_s16  }
  0x22   : > { %v155_v3 = vld [vmem:[%s135_s10] sm:$0xf]  ;;  %s785_s17 = scalar_lea.vmem [#allocation4], %s161_s11  ;;  %s139_s19 = scalar_lea.vmem [#allocation3], %s773_s8 }
  0x23   : > { %156 = vst [vmem:[#allocation0] sm:$0xf] %v155_v3  ;;  %170 = vst [vmem:[#allocation9] sm:$0xff] %v780_v2  ;;  %s146_s20 = scalar_lea.vmem [#allocation5], %s777_s9  ;;  %s152_s21 = scalar_lea.vmem [#allocation8], %s777_s9 }
  0x24   : > { %165 = vst [vmem:[%s785_s17] sm:$0x1] %v693_v4  ;;  %s791_s22 = scalar_lea.vmem [#allocation7], %s161_s11  ;;  %s793_s26 = smov 0  }
  0x2a   : > { %v159_v5 = vld [vmem:[#allocation0] sm:$0xff] }
  0x2b   : > { %160 = vst [vmem:[#allocation2] sm:$0xff] %v159_v5 }
  0x2c LB: >> { %vm186_vm0 = vcmp.lt.s32.totalorder %v780_v2, 3  ;;  %v800_v8 = vstv %s691_s26  ;;  %s227_s27 = ssub.s32 128, %s691_s26  ;;  %v233_v38 = vand.u32 127, %v166_v1  ;;  %v236_v40 = vld [vmem:[%s785_s17] ss:$0 sm:$0xff]  ;;  %s239_s28 = scalar_lea.vmem [#allocation2], %s691_s26  ;;  %s691_s26 = sphi %s793_s26, %s176_s26  }
  0x2d   : >> { %vm185_vm1 = vcmp.ge.s32.totalorder %v780_v2, %v800_v8  ;;  %s245_s30 = scalar_lea.vmem [#allocation9], %s691_s26  ;;  %vm265_vm15 = vcmp.gt.s32.totalorder %v780_v2, %v800_v8  ;;  %s176_s26 = sadd.s32 1, %s691_s26  }
  0x2e   : >> { %vm187_vm3 = vmand %vm185_vm1, %vm186_vm0  ;;  %vm257_vm12 = vcmp.gt.s32.totalorder %v233_v38, %v800_v8  ;;  %vm234_vm13 = vcmp.eq.s32.totalorder %v233_v38, %v800_v8  ;;  %v247_v42 = vld [vmem:[%s245_s30] ss:$0 sm:$0xff]  ;;  %p173_p11 = scmp.ge.s32.totalorder %s176_s26, 3  }
  0x2f   : >> { %vm269_vm1 = vmand %vm265_vm15, %vm234_vm13  ;;  %s900_s6 = sshrl.u32 (%p173_p11), %s736_s16, 3  ;;  %s564_s10 = sshll.u32 (%p173_p11), %s736_s16, 2 }
  0x30   : > { %s565_s11 = sshll.u32 (%p173_p11), %s900_s6, 5 }
  0x32   : >> { %v181_v6 = vld [vmem:[#allocation2] sm:$0xff]  ;;  %v241_v41 = vld [vmem:[%s239_s28] ss:$0 sm:$0xff] }
  0x33   : >> { %v182_v7 = vand.u32 2147483647, %v181_v6 }
  0x35   : >> { %vm560_vm2 = vcmp.gt.f32.partialorder %v182_v7, -inf }
  0x36   : >> { %vm189_vm4 = vmand %vm187_vm3, %vm560_vm2 }
  0x37   : >> { %v190_v9 = vsel %vm189_vm4, %v780_v2, %v800_v8  ;;  %v191_v10 = vsel %vm189_vm4, %v182_v7, -inf }
  0x38   : >> { %v192_v11 = vrot.slane %v191_v10, 1  ;;  %v193_v12 = vrot.slane %v190_v9, 1 }
  0x3a   : >> { %vm194_vm5 = vcmp.ge.f32.partialorder %v192_v11, %v191_v10  ;;  %v197_v13 = vrot.slane %v192_v11, 1  ;;  %v198_v14 = vrot.slane %v193_v12, 1 }
  0x3b   : >> { %v195_v15 = vsel %vm194_vm5, %v192_v11, %v191_v10  ;;  %v196_v16 = vsel %vm194_vm5, %v193_v12, %v190_v9 }
  0x3c   : >> { %vm199_vm6 = vcmp.ge.f32.partialorder %v197_v13, %v195_v15  ;;  %v202_v17 = vrot.slane %v197_v13, 1  ;;  %v203_v18 = vrot.slane %v198_v14, 1 }
  0x3d   : >> { %v200_v19 = vsel %vm199_vm6, %v197_v13, %v195_v15  ;;  %v201_v20 = vsel %vm199_vm6, %v198_v14, %v196_v16 }
  0x3e   : >> { %vm204_vm7 = vcmp.ge.f32.partialorder %v202_v17, %v200_v19  ;;  %v207_v21 = vrot.slane %v202_v17, 1  ;;  %v208_v22 = vrot.slane %v203_v18, 1 }
  0x3f   : >> { %v205_v23 = vsel %vm204_vm7, %v202_v17, %v200_v19  ;;  %v206_v24 = vsel %vm204_vm7, %v203_v18, %v201_v20 }
  0x40   : >> { %vm209_vm8 = vcmp.ge.f32.partialorder %v207_v21, %v205_v23  ;;  %v212_v25 = vrot.slane %v207_v21, 1  ;;  %v213_v26 = vrot.slane %v208_v22, 1 }
  0x41   : >> { %v210_v27 = vsel %vm209_vm8, %v207_v21, %v205_v23  ;;  %v211_v28 = vsel %vm209_vm8, %v208_v22, %v206_v24 }
  0x42   : >> { %vm214_vm9 = vcmp.ge.f32.partialorder %v212_v25, %v210_v27  ;;  %v217_v29 = vrot.slane %v212_v25, 1  ;;  %v218_v30 = vrot.slane %v213_v26, 1 }
  0x43   : >> { %v215_v31 = vsel %vm214_vm9, %v212_v25, %v210_v27  ;;  %v216_v32 = vsel %vm214_vm9, %v213_v26, %v211_v28 }
  0x44   : >> { %vm219_vm10 = vcmp.ge.f32.partialorder %v217_v29, %v215_v31  ;;  %v222_v33 = vrot.slane %v217_v29, 1  ;;  %v223_v34 = vrot.slane %v218_v30, 1 }
  0x45   : >> { %v220_v35 = vsel %vm219_vm10, %v217_v29, %v215_v31  ;;  %v221_v36 = vsel %vm219_vm10, %v218_v30, %v216_v32 }
  0x46   : >> { %vm224_vm11 = vcmp.ge.f32.partialorder %v222_v33, %v220_v35 }
  0x47   : >> { %v226_v37 = vsel %vm224_vm11, %v223_v34, %v221_v36 }
  0x48   : >> { %228 = vrot.lane.b32.xlu0 %v226_v37, %s227_s27  ;;  %s357_s27 = scalar_lea.vmem (%p173_p11), %s897_s1, %s564_s10 }
  0xba   : >> { %v229_v39 = vpop.permute.xlu0 %228 }
  0xbb   : >> { %569 = vpush %v229_v39 }
  0xec   : >> { %s570_s29 = spop %569 }
  0xed   : >> { %v235_v43 = vstv %s570_s29  ;;  %s240_s4 = scalar_lea.vmem [#allocation2], %s570_s29  ;;  %s246_s5 = scalar_lea.vmem [#allocation9], %s570_s29 }
  0xee   : >> { %v242_v44 = vld [vmem:[%s240_s4] ss:$0 sm:$0xff]  ;;  %v237_v46 = vsel %vm234_vm13, %v235_v43, %v236_v40 }
  0xef   : >> { %v248_v45 = vld [vmem:[%s246_s5] ss:$0 sm:$0xff]  ;;  %243 = vst [vmem:[%s240_s4] sm:$0x1] %v241_v41  ;;  %vm251_vm14 = vcmp.ne.f32.partialorder %v242_v44, 0.0  ;;  %238 = vst [vmem:[%s785_s17] sm:$0x1] %v237_v46  ;;  %v258_v53 = vsel %vm257_vm12, %v242_v44, 0.0 }
  0xf0   : >> { %249 = vst [vmem:[%s246_s5] sm:$0x1] %v247_v42  ;;  %244 = vst [vmem:[%s239_s28] sm:$0x1] %v242_v44  ;;  %s399_s4 = sshll.u32 (%p173_p11), %s146_s20, 4  ;;  %s348_s5 = scalar_lea.sflag (%p173_p11), [#allocation6], %s144_s7  ;;  %s400_s4 = int_to_ptr.vmem [resolvable:$true] %s399_s4 }
  0xf1   : >> { %250 = vst [vmem:[%s245_s30] sm:$0x1] %v248_v45  ;;  %vm252_vm0 = vmand %vm234_vm13, %vm251_vm14  ;;  %s843_s30 = scalar_lea.hbm (%p173_p11), %s898_s2, %s565_s11  ;;  %s621_s6 = scalar_lea.vmem (%p173_p11), %s400_s4, 32 }
  0xf2   : >> { %v253_v47 = vsel %vm252_vm0, %v242_v44, 1.0  ;;  %p622_p12 = scmp.ne.s32.totalorder (%p173_p11), %s400_s4, %s621_s6  ;;  %s694_s17 = smov (%p173_p11), [#allocation5]  }
  0xf3   : >> { %v266_v48 = vsel %vm265_vm15, %v253_v47, 1.0  ;;  %s625_s10 = sshll.u32 (%p173_p11), %s694_s17, 4  ;;  %s626_s10 = int_to_ptr.vmem [resolvable:$false] %s625_s10 }
  0xf4   : >> { %619 = vrcp.f32 %v266_v48  ;;  %p623_p13 = pnand (%p173_p11), %p622_p12, %p753_p5  ;;  %s627_s8 = scalar_lea.vmem (%p173_p11), %s626_s10, 64 }
  0xf5   : > { %p628_p1 = scmp.lt.s32.totalorder (%p173_p11), %s400_s4, %s626_s10  ;;  %p629_p2 = scmp.lt.s32.totalorder (%p173_p11), %s627_s8, %s621_s6 }
  0xf6   : > { %v334_v59 = vld [vmem:[#allocation4] sm:$0x3] (%p173_p11)  ;;  %p624_p0 = pneg (%p173_p11), %p623_p13 }
  0xf7   : >> { %v262_v50 = vld [vmem:[#allocation2] sm:$0xff]  ;;  %336 = vst [vmem:[%s146_s20] sm:$0x3] (%p173_p11), %v334_v59  ;;  %p630_p3 = por (%p173_p11), %p629_p2, %p628_p1 }
  0xf8   : > { %v276_v57 = vld [vmem:[#allocation9] sm:$0xff] (%p173_p11) }
  0xf9   : > { %p631_p4 = pnand (%p173_p11), %p630_p3, %p624_p0 }
  0xfe   : >> { %v620_v49 = vpop.eup %619 }
  0xff   : >> { %v268_v51 = vmul.f32 %v620_v49, %v262_v50 }
 0x101   : >> { %v270_v52 = vsel %vm269_vm1, %v268_v51, 0.0 }
 0x102   : >> { %271 = vadd.xlane.f32.xlu0 %v270_v52 }
 0x12f   : > { %292 = vxpose.xlu0.b32.start.end [1/1] (short) (narrow) (%p173_p11), %v276_v57, 8 }
 0x18e   : > { %175 = sbr.rel (!%p173_p11) target bundleno = 44 (0x2c), region = 202 }
 0x18f   : >> { %v272_v54 = vpop.xlane.xlu0 %271 }
 0x190   : >> { %v273_v55 = vmul.f32 %v272_v54, %v258_v53 }
 0x192   : >> { %v274_v56 = vsub.f32 %v268_v51, %v273_v55 }
 0x194   : >> { %275 = vst [vmem:[#allocation2] sm:$0xff] %v274_v56 }
 0x19b   : > { %v328_v58 = vld [vmem:[#allocation2] sm:$0xf] }
 0x19c   : > { %330 = vst [vmem:[%s139_s19] sm:$0xf] %v328_v58 }
 0x1a3   : > { %v373_v60 = vld [vmem:[%s139_s19] sm:$0xf] }
 0x1a4   : > { %374 = vst [vmem:[%s357_s27] sm:$0xf] %v373_v60 }
 0x1a5   : > { %634 = shalt.err (!%p631_p4)
}
 0x1a6   : > { %s635_s7 = scalar_lea.hbm %s843_s30, 32  ;;  %s639_s11 = scalar_lea.hbm %s898_s2, 32 }
 0x1a7   : > { %p636_p8 = scmp.ne.s32.totalorder %s843_s30, %s635_s7  ;;  %p640_p11 = scmp.lt.u32.totalorder %s843_s30, %s898_s2 }
 0x1a8   : > { %p641_p12 = scmp.lt.u32.totalorder %s639_s11, %s635_s7  ;;  %p643_p0 = scmp.lt.u32.totalorder %s635_s7, %s843_s30 }
 0x1a9   : > { %p637_p9 = pnand %p636_p8, %p753_p5 }
 0x1aa   : > { %p642_p13 = por %p641_p12, %p640_p11 }
 0x1ab   : > { %p638_p10 = pneg %p637_p9 }
 0x1ac   : > { %p644_p1 = por %p643_p0, %p642_p13 }
 0x1ae   : > { %p645_p2 = pnand %p644_p1, %p638_p10 }
 0x1b0   : > { %648 = shalt.err (!%p645_p2)
}
 0x1b1   : > { %571 = dma.vmem_to_hbm [thread:$0]  (%p753_p5), %s400_s4, 32, %s843_s30, %s348_s5   ;;  %v308_v61 = vpop.trf.xlu0 }
 0x1b2   : > { %324 = vst [vmem:[%s791_s22] sm:$0x1] %v308_v61  ;;  %s903_s6 = sshrl.u32 (%p753_p5), %s736_s16, 3 }
 0x1b3   : > { %s566_s28 = sshll.u32 (%p753_p5), %s903_s6, 1 }
 0x1b4   : > { %405 = sbr.rel (!%p753_p5) target bundleno = 451 (0x1c3), region = 96  ;;  %s408_s10 = scalar_lea.vmem (%p753_p5), %s899_s3, %s566_s28 }
 0x1b9   : > { %v340_v62 = vld [vmem:[#allocation7] sm:$0x3] }
 0x1ba   : > { %342 = vst [vmem:[%s152_s21] sm:$0x3] %v340_v62 }
 0x1c1   : > { %v424_v63 = vld [vmem:[%s152_s21] sm:$0x3] }
 0x1c2   : > { %425 = vst [vmem:[%s408_s10] sm:$0x3] %v424_v63 }
 0x1c3 PF: > { %s452_s22 = sand.u32 1, %s675_s12   ;;  %p574_p5 = pnand %p552_p7, %p757_p6 }
 0x1c4   : > { %s453_s24 = scalar_lea.sflag [#allocation6], %s452_s22 }
 0x1c5   : > { %670 = dma.done.wait (!%p574_p5), %s453_s24, 32  }
 0x1c6   : > { %672 = vsyncadd (!%p574_p5), %s453_s24, 4294967264  ;;  %p10_p3 = scmp.ge.s32.totalorder %s740_s18, 4   ;;  %s904_s12 = smov %s679_s13 }
 0x1c7   : > { %s905_s13 = smov %s683_s14  ;;  %s906_s14 = smov %s751_s23 }
 0x1c8   : > { %s907_s15 = smov %s740_s18  ;;  %12 = sbr.rel (!%p10_p3) target bundleno = 3 (0x3), region = 213 }
 0x1cf   :  { %465 = vsyncpa [#allocation6], 1 }
 0x1d0   :  { %467 = vsyncpa [#allocation6 + $0x1], 1 }

// kernel: custom-call.13
= control target key start
LH: loop header
LB: loop body
LE: loop exit
PB: predicated region body
PF: predicated region fallthrough
CT: control target
= control target key end

     0   :  { %s343_s6 = smov 0   ;;  %s345_s7 = smov 0   ;;  %s390_s0 = inlined_call_operand.vmem [shape: f32[2,1,3,3], index: 0, kind: input, shape index: {}]   ;;  %s391_s1 = inlined_call_operand.vmem [shape: f32[2,1,3,3], index: 1, kind: output, shape index: {}]  }
   0x1   :  { %s347_s8 = smov 0  }
   0x2 LB: > { %s269_s9 = sadd.s32 4294967295, %s330_s8   ;;  %s33_s10 = sadd.s32 1, %s326_s7  ;;  %s330_s8 = sphi %s347_s8, %s7_s8   ;;  %s326_s7 = sphi %s345_s7, %s393_s7   ;;  %s322_s6 = sphi %s343_s6, %s392_s6  }
   0x3   : > { %p35_p0 = scmp.ge.s32.totalorder %s33_s10, 2  ;;  %p271_p1 = scmp.ge.s32.totalorder %s330_s8, 2 }
   0x4   : > { %s49_s11 = sand.u32 (!%p271_p1), 1, %s330_s8   ;;  %s273_s12 = sshll.u32 (!%p271_p1), %s326_s7, 2 }
   0x5   : > { %s395_s10 = smov (%p35_p0, %s33_s10), 0  ;;  %47 = sbr.rel (%p271_p1) target bundleno = 12 (0xc), region = 16 }
   0x6   : > { %s272_s13 = sshll.u32 (!%p271_p1), %s49_s11, 2  ;;  %s56_s16 = scalar_lea.vmem (!%p271_p1), %s390_s0, %s273_s12 }
   0x7   : > { %v72_v0 = vld [vmem:[%s56_s16] sm:$0xf] (!%p271_p1)  ;;  %s51_s17 = scalar_lea.vmem (!%p271_p1), [#allocation1], %s272_s13 }
   0x8   : > { %73 = vst [vmem:[%s51_s17] sm:$0xf] (!%p271_p1), %v72_v0 }
   0xc PF: > { %p274_p2 = scmp.ge.s32.totalorder %s330_s8, 1  ;;  %p89_p3 = scmp.lt.s32.totalorder %s330_s8, 3 }
   0xe   : > { %p90_p4 = pnand %p274_p2, %p89_p3 }
  0x10   : > { %93 = sbr.rel (%p90_p4) target bundleno = 511 (0x1ff), region = 50 }
  0x17   : > { %s370_s18 = sand.u32 1, %s269_s9   ;;  %v111_v1 = vlaneseq  ;;  %v332_v11 = vmov -1.0   ;;  %s278_s22 = sshll.u32 %s322_s6, 2 }
  0x18   : > { %s275_s19 = sshll.u32 %s370_s18, 2  ;;  %s178_s25 = scalar_lea.vmem %s391_s1, %s278_s22 }
  0x19   : > { %s102_s20 = scalar_lea.vmem [#allocation1], %s275_s19  ;;  %v112_v3 = vand.u32 127, %v111_v1  ;;  %v115_v4 = vshrl.u32 %v111_v1, 7  ;;  %s106_s21 = scalar_lea.vmem [#allocation3], %s275_s19 }
  0x1a   : > { %v109_v2 = vld [vmem:[%s102_s20] sm:$0xf] }
  0x1b   : > { %110 = vst [vmem:[#allocation0] sm:$0xf] %v109_v2  ;;  %vm113_vm0 = vcmp.lt.s32.totalorder %v112_v3, 3  ;;  %vm122_vm1 = vcmp.ge.s32.totalorder %v115_v4, %v112_v3  ;;  %vm117_vm2 = vcmp.eq.s32.totalorder %v115_v4, %v112_v3  ;;  %vm136_vm4 = vcmp.eq.s32.totalorder %v112_v3, 0 }
  0x1c   : > { %vm123_vm3 = vmand %vm122_vm1, %vm113_vm0  ;;  %vm133_vm5 = vcmp.eq.s32.totalorder %v112_v3, %v115_v4  ;;  %v137_v12 = vsel %vm136_vm4, 1.0, %v332_v11  ;;  %vm144_vm6 = vcmp.eq.s32.totalorder %v112_v3, 1  ;;  %vm154_vm7 = vcmp.eq.s32.totalorder %v112_v3, 2 }
  0x1d   : > { %v138_v13 = vsel %vm133_vm5, %v137_v12, 0.0 }
  0x22   : > { %v118_v5 = vld [vmem:[#allocation0] sm:$0xff] }
  0x23   : > { %v119_v6 = vsel %vm117_vm2, %v118_v5, 0.0  ;;  %v124_v7 = vsel %vm123_vm3, %v118_v5, 0.0 }
  0x24   : > { %120 = vadd.xlane.f32.xlu0 %v119_v6 }
  0xb1   : > { %v121_v8 = vpop.xlane.xlu0 %120 }
  0xb2   : > { %306 = vrcp.f32 %v121_v8  ;;  %vm161_vm8 = vweird.f32 %v121_v8 }
  0xbc   : > { %v307_v9 = vpop.eup %306 }
  0xbd   : > { %v126_v10 = vmul.f32 %v307_v9, %v124_v7 }
  0xbf   : > { %127 = vst [vmem:[#allocation4] sm:$0xff] %v126_v10 }
  0xc6   : > { %v140_v14 = vld [vmem:[#allocation4 + $0x1] ss:$0 sm:$0xff]  ;;  %v150_v17 = vld [vmem:[#allocation4 + $0x2] ss:$0 sm:$0xff] }
  0xc7   : > { %v141_v15 = vxor.u32 2147483648, %v140_v14  ;;  %v151_v19 = vxor.u32 2147483648, %v150_v17 }
  0xc9   : > { %v145_v16 = vmul.f32 %v141_v15, %v138_v13 }
  0xcb   : > { %146 = vadd.xlane.f32.xlu0 %v145_v16 }
 0x158   : > { %v147_v18 = vpop.xlane.xlu0 %146 }
 0x159   : > { %v148_v20 = vsel %vm144_vm6, %v147_v18, %v138_v13 }
 0x15a   : > { %v155_v21 = vmul.f32 %v151_v19, %v148_v20 }
 0x15c   : > { %156 = vadd.xlane.f32.xlu1 %v155_v21 }
 0x1e9   : > { %v157_v22 = vpop.xlane.xlu1 %156 }
 0x1ea   : > { %v158_v23 = vsel %vm154_vm7, %v157_v22, %v148_v20 }
 0x1eb   : > { %v160_v24 = vmul.f32 %v307_v9, %v158_v23 }
 0x1ed   : > { %v162_v25 = vsel %vm161_vm8, %v158_v23, %v160_v24 }
 0x1ee   : > { %163 = vst [vmem:[#allocation2] sm:$0xff] %v162_v25 }
 0x1f5   : > { %v167_v26 = vld [vmem:[#allocation2] sm:$0xf] }
 0x1f6   : > { %169 = vst [vmem:[%s106_s21] sm:$0xf] %v167_v26 }
 0x1fd   : > { %v194_v27 = vld [vmem:[%s106_s21] sm:$0xf] }
 0x1fe   : > { %195 = vst [vmem:[%s178_s25] sm:$0xf] %v194_v27 }
 0x1ff PF: > { %s7_s8 = sadd.s32 1, %s330_s8   ;;  %s392_s6 = smov %s326_s7 }
 0x200   : > { %p4_p5 = scmp.ge.s32.totalorder %s7_s8, 4   ;;  %s393_s7 = smov %s395_s10 }
 0x202   :  { %6 = sbr.rel (!%p4_p5) target bundleno = 2 (0x2), region = 112 }

// kernel: custom-call.12
= control target key start
LH: loop header
LB: loop body
LE: loop exit
PB: predicated region body
PF: predicated region fallthrough
CT: control target
= control target key end

     0   :  { %s342_s6 = smov 0   ;;  %s344_s7 = smov 0   ;;  %s389_s0 = inlined_call_operand.vmem [shape: f32[2,1,3,3], index: 0, kind: input, shape index: {}]   ;;  %s390_s1 = inlined_call_operand.vmem [shape: f32[2,1,3,3], index: 1, kind: output, shape index: {}]  }
   0x1   :  { %s346_s8 = smov 0  }
   0x2 LB: > { %s268_s9 = sadd.s32 4294967295, %s329_s8   ;;  %s33_s10 = sadd.s32 1, %s325_s7  ;;  %s329_s8 = sphi %s346_s8, %s7_s8   ;;  %s325_s7 = sphi %s344_s7, %s392_s7   ;;  %s321_s6 = sphi %s342_s6, %s391_s6  }
   0x3   : > { %p35_p0 = scmp.ge.s32.totalorder %s33_s10, 2  ;;  %p270_p1 = scmp.ge.s32.totalorder %s329_s8, 2 }
   0x4   : > { %s49_s11 = sand.u32 (!%p270_p1), 1, %s329_s8   ;;  %s272_s12 = sshll.u32 (!%p270_p1), %s325_s7, 2 }
   0x5   : > { %s394_s10 = smov (%p35_p0, %s33_s10), 0  ;;  %47 = sbr.rel (%p270_p1) target bundleno = 12 (0xc), region = 16 }
   0x6   : > { %s271_s13 = sshll.u32 (!%p270_p1), %s49_s11, 2  ;;  %s56_s16 = scalar_lea.vmem (!%p270_p1), %s389_s0, %s272_s12 }
   0x7   : > { %v72_v0 = vld [vmem:[%s56_s16] sm:$0xf] (!%p270_p1)  ;;  %s51_s17 = scalar_lea.vmem (!%p270_p1), [#allocation1], %s271_s13 }
   0x8   : > { %73 = vst [vmem:[%s51_s17] sm:$0xf] (!%p270_p1), %v72_v0 }
   0xc PF: > { %p273_p2 = scmp.ge.s32.totalorder %s329_s8, 1  ;;  %p89_p3 = scmp.lt.s32.totalorder %s329_s8, 3 }
   0xe   : > { %p90_p4 = pnand %p273_p2, %p89_p3 }
  0x10   : > { %93 = sbr.rel (%p90_p4) target bundleno = 511 (0x1ff), region = 50 }
  0x17   : > { %s369_s18 = sand.u32 1, %s268_s9   ;;  %v111_v1 = vlaneseq  ;;  %v331_v11 = vmov -1.0   ;;  %s277_s22 = sshll.u32 %s321_s6, 2 }
  0x18   : > { %s274_s19 = sshll.u32 %s369_s18, 2  ;;  %s177_s25 = scalar_lea.vmem %s390_s1, %s277_s22 }
  0x19   : > { %s102_s20 = scalar_lea.vmem [#allocation1], %s274_s19  ;;  %v112_v3 = vand.u32 127, %v111_v1  ;;  %v115_v4 = vshrl.u32 %v111_v1, 7  ;;  %s106_s21 = scalar_lea.vmem [#allocation3], %s274_s19 }
  0x1a   : > { %v109_v2 = vld [vmem:[%s102_s20] sm:$0xf] }
  0x1b   : > { %110 = vst [vmem:[#allocation0] sm:$0xf] %v109_v2  ;;  %vm113_vm0 = vcmp.lt.s32.totalorder %v112_v3, 3  ;;  %vm122_vm1 = vcmp.le.s32.totalorder %v115_v4, %v112_v3  ;;  %vm117_vm2 = vcmp.eq.s32.totalorder %v115_v4, %v112_v3  ;;  %vm136_vm4 = vcmp.eq.s32.totalorder %v112_v3, 2 }
  0x1c   : > { %vm123_vm3 = vmand %vm122_vm1, %vm113_vm0  ;;  %vm133_vm5 = vcmp.eq.s32.totalorder %v112_v3, %v115_v4  ;;  %v137_v12 = vsel %vm136_vm4, 1.0, %v331_v11  ;;  %vm144_vm6 = vcmp.eq.s32.totalorder %v112_v3, 1  ;;  %vm153_vm7 = vcmp.eq.s32.totalorder %v112_v3, 0 }
  0x1d   : > { %v138_v13 = vsel %vm133_vm5, %v137_v12, 0.0 }
  0x22   : > { %v118_v5 = vld [vmem:[#allocation0] sm:$0xff] }
  0x23   : > { %v119_v6 = vsel %vm117_vm2, %v118_v5, 0.0  ;;  %v124_v7 = vsel %vm123_vm3, %v118_v5, 0.0 }
  0x24   : > { %120 = vadd.xlane.f32.xlu0 %v119_v6 }
  0xb1   : > { %v121_v8 = vpop.xlane.xlu0 %120 }
  0xb2   : > { %305 = vrcp.f32 %v121_v8  ;;  %vm160_vm8 = vweird.f32 %v121_v8 }
  0xbc   : > { %v306_v9 = vpop.eup %305 }
  0xbd   : > { %v126_v10 = vmul.f32 %v306_v9, %v124_v7 }
  0xbf   : > { %127 = vst [vmem:[#allocation4] sm:$0xff] %v126_v10 }
  0xc6   : > { %v140_v14 = vld [vmem:[#allocation4 + $0x1] ss:$0 sm:$0xff]  ;;  %v149_v17 = vld [vmem:[#allocation4] ss:$0 sm:$0xff] }
  0xc7   : > { %v141_v15 = vxor.u32 2147483648, %v140_v14  ;;  %v150_v19 = vxor.u32 2147483648, %v149_v17 }
  0xc9   : > { %v145_v16 = vmul.f32 %v141_v15, %v138_v13 }
  0xcb   : > { %146 = vadd.xlane.f32.xlu0 %v145_v16 }
 0x158   : > { %v147_v18 = vpop.xlane.xlu0 %146 }
 0x159   : > { %v148_v20 = vsel %vm144_vm6, %v147_v18, %v138_v13 }
 0x15a   : > { %v154_v21 = vmul.f32 %v150_v19, %v148_v20 }
 0x15c   : > { %155 = vadd.xlane.f32.xlu1 %v154_v21 }
 0x1e9   : > { %v156_v22 = vpop.xlane.xlu1 %155 }
 0x1ea   : > { %v157_v23 = vsel %vm153_vm7, %v156_v22, %v148_v20 }
 0x1eb   : > { %v159_v24 = vmul.f32 %v306_v9, %v157_v23 }
 0x1ed   : > { %v161_v25 = vsel %vm160_vm8, %v157_v23, %v159_v24 }
 0x1ee   : > { %162 = vst [vmem:[#allocation2] sm:$0xff] %v161_v25 }
 0x1f5   : > { %v166_v26 = vld [vmem:[#allocation2] sm:$0xf] }
 0x1f6   : > { %168 = vst [vmem:[%s106_s21] sm:$0xf] %v166_v26 }
 0x1fd   : > { %v193_v27 = vld [vmem:[%s106_s21] sm:$0xf] }
 0x1fe   : > { %194 = vst [vmem:[%s177_s25] sm:$0xf] %v193_v27 }
 0x1ff PF: > { %s7_s8 = sadd.s32 1, %s329_s8   ;;  %s391_s6 = smov %s325_s7 }
 0x200   : > { %p4_p5 = scmp.ge.s32.totalorder %s7_s8, 4   ;;  %s392_s7 = smov %s394_s10 }
 0x202   :  { %6 = sbr.rel (!%p4_p5) target bundleno = 2 (0x2), region = 111 }

// kernel: moge_mesh_forward.1
= control target key start
LH: loop header
LB: loop body
LE: loop exit
PB: predicated region body
PF: predicated region fallthrough
CT: control target
= control target key end

     0   :  { %s1170_s0 = inlined_call_operand.vmem [shape: f32[18], index: 0, kind: input, shape index: {}]   ;;  %s1171_s1 = inlined_call_operand.vmem [shape: f32[2], index: 1, kind: input, shape index: {}]   ;;  %s1172_s2 = inlined_call_operand.vmem [shape: f32[2,16,128], index: 2, kind: input, shape index: {}, may-alias: {2,3,4}]   ;;  %s1173_s3 = inlined_call_operand.vmem [shape: f32[2,16,128], index: 3, kind: input, shape index: {}, may-alias: {2,3,4}]   ;;  %s1174_s4 = inlined_call_operand.vmem [shape: f32[2,16,128], index: 4, kind: input, shape index: {}, may-alias: {2,3,4}]   ;;  %s1175_s5 = inlined_call_operand.vmem [shape: f32[2,5,16,128], index: 5, kind: output, shape index: {}]  }
   0x1   :  { %1176 = sst [smem:[#allocation9_spill]] %s1170_s0 }
   0x2   :  { %1177 = sst [smem:[#allocation10_spill]] %s1171_s1 }
   0x3   :  { %1178 = sst [smem:[#allocation11_spill]] %s1172_s2 }
   0x4   :  { %10 = vsyncpa [#allocation3], 0 }
   0x5   :  { %11 = vsyncpa [#allocation5], 0  ;;  %s953_s18 = smov 0   ;;  %s955_s19 = smov 0  }
   0x6   :  { %s957_s20 = smov 0   ;;  %s959_s21 = smov 0  }
   0x7   :  { %s961_s22 = smov 0   ;;  %s963_s23 = smov 0  }
   0x8   :  { %s965_s24 = smov 0  }
   0x9 LB: > { %s703_s25 = sadd.s32 4294967295, %s915_s24   ;;  %s26_s26 = sadd.s32 1, %s907_s22  ;;  %s915_s24 = sphi %s965_s24, %s17_s24   ;;  %s911_s23 = sphi %s963_s23, %s1192_s23   ;;  %s907_s22 = sphi %s961_s22, %s1191_s22   ;;  %s903_s21 = sphi %s959_s21, %s1190_s21   ;;  %s899_s20 = sphi %s957_s20, %s1189_s20   ;;  %s895_s19 = sphi %s955_s19, %s1188_s19   ;;  %s891_s18 = sphi %s953_s18, %s1187_s18  }
   0xa   : > { %p27_p0 = scmp.ge.s32.totalorder %s26_s26, 2  ;;  %s29_s27 = sadd.s32 1, %s911_s23 }
   0xb   : > { %s176_s28 = sadd.s32 1, %s895_s19  ;;  %p186_p1 = scmp.ne.s32.totalorder %s895_s19, %s891_s18 }
   0xc   : > { %s1194_s26 = smov (%p27_p0, %s26_s26), 0  ;;  %s1196_s27 = smov (!%p27_p0, %s29_s27), %s911_s23 }
   0xd   : > { %s172_s29 = ssub.s32 %s907_s22, %s1194_s26  ;;  %p187_p2 = scmp.eq.s32.totalorder %s703_s25, 3 }
   0xe   : > { %p31_p3 = scmp.ge.s32.totalorder %s1196_s27, 2  ;;  %p707_p4 = scmp.ge.s32.totalorder %s915_s24, 1 }
   0xf   : > { %p1000_p5 = por %p187_p2, %p186_p1  ;;  %p200_p6 = scmp.lt.s32.totalorder %s915_s24, 5 }
  0x10   : > { %s1198_s27 = smov (%p31_p3, %s1196_s27), 0  ;;  %p1013_p8 = scmp.eq.s32.totalorder %s703_s25, 0 }
  0x11   : > { %p1007_p7 = pnand %p707_p4, %p200_p6  ;;  %s171_s7 = ssub.s32 %s911_s23, %s1198_s27 }
  0x12   : > { %s173_s9 = sor.u32 %s172_s29, %s171_s7  ;;  %s1182_s0 = sld [smem:[#allocation9_spill]] }
  0x13   : > { %p750_p9 = pneg %p1007_p7  ;;  %p174_p10 = scmp.eq.s32.totalorder %s173_s9, 0 }
  0x15   : > { %p1024_p11 = pnand %p1013_p8, %p750_p9 }
  0x16   : > { %s1029_s14 = scalar_select %p174_p10, %s895_s19, %s176_s28  }
  0x17   : > { %p825_p13 = pneg %p1024_p11 }
  0x18   : > { %s213_s12 = sshll.u32 %s1182_s0, 4  ;;  %s214_s12 = int_to_ptr.vmem [resolvable:$true] %s213_s12 }
  0x19   : > { %s823_s15 = scalar_lea.vmem %s214_s12, 16  ;;  %p831_p2 = scmp.lt.s32.totalorder %s214_s12, %s214_s12 }
  0x1a   : > { %p824_p12 = scmp.ne.s32.totalorder %s214_s12, %s823_s15  ;;  %p832_p3 = scmp.lt.s32.totalorder %s823_s15, %s823_s15 }
  0x1c   : > { %p826_p0 = pnand %p825_p13, %p824_p12  ;;  %p833_p4 = por %p832_p3, %p831_p2 }
  0x1e   : > { %p827_p1 = pneg %p826_p0 }
  0x20   : > { %p834_p6 = pnand %p833_p4, %p827_p1 }
  0x22   : > { %837 = shalt.err (!%p834_p6)
}
  0x23   : > { %s917_s16 = smov [#allocation2]   ;;  %s1184_s1 = sld [smem:[#allocation10_spill]] }
  0x24   : > { %753 = dma.vmem_to_smem (!%p1024_p11), %s214_s12, 16, %s917_s16, [#allocation3]  }
  0x29   : > { %s224_s28 = sshll.u32 %s1184_s1, 4  ;;  %s225_s28 = int_to_ptr.vmem [resolvable:$true] %s224_s28 }
  0x2a   : > { %s838_s29 = scalar_lea.vmem %s225_s28, 16  ;;  %p846_p0 = scmp.lt.s32.totalorder %s225_s28, %s225_s28 }
  0x2b   : > { %p839_p9 = scmp.ne.s32.totalorder %s225_s28, %s838_s29  ;;  %p847_p2 = scmp.lt.s32.totalorder %s838_s29, %s838_s29 }
  0x2d   : > { %p841_p10 = pnand %p839_p9, %p825_p13  ;;  %p848_p1 = por %p847_p2, %p846_p0 }
  0x2f   : > { %p842_p12 = pneg %p841_p10 }
  0x31   : > { %p849_p3 = pnand %p848_p1, %p842_p12 }
  0x33   : > { %852 = shalt.err (!%p849_p3)
}
  0x34   : > { %s918_s7 = smov [#allocation4]   ;;  %282 = sbr.rel (%p1007_p7) target bundleno = 230 (0xe6), region = 40 }
  0x35   : > { %756 = dma.vmem_to_smem (!%p1024_p11), %s225_s28, 16, %s918_s7, [#allocation5]  }
  0x3b   : > { %882 = dma.done.wait (%p1013_p8), [#allocation3], 16  }
  0x3c   : > { %884 = vsyncadd (%p1013_p8), [#allocation3], 4294967280 }
  0x3d   : > { %886 = dma.done.wait (%p1013_p8), [#allocation5], 16  }
  0x3e   : > { %888 = vsyncadd (%p1013_p8), [#allocation5], 4294967280 }
  0x3f   : > { %292 = sfence }
  0x40   : > { %p339_p7 = scmp.lt.s32.totalorder %s903_s21, 1  ;;  %p341_p11 = scmp.lt.s32.totalorder %s899_s20, 1  ;;  %v379_v0 = vlaneseq }
  0x41   : > { %s716_s6 = sadd.s32 4294967295, %s899_s20  ;;  %s361_s9 = sadd.s32 1, %s899_s20 }
  0x42   : > { %s340_s10 = scalar_select %p339_p7, %s903_s21, 1  ;;  %v380_v1 = vshrl.u32 %v379_v0, 7  ;;  %v1072_v6 = vand.u32 127, %v379_v0 }
  0x43   : > { %s342_s11 = scalar_select %p341_p11, %s899_s20, 1 }
  0x44   : > { %s714_s12 = sshll.u32 %s340_s10, 1  ;;  %p348_p13 = scmp.gt.s32.totalorder %s716_s6, 0  ;;  %v400_v5 = vsub.s32 0, %v380_v1  ;;  %v472_v8 = vcvt.s32.f32 %v1072_v6  ;;  %vm388_vm0 = vcmp.eq.s32.totalorder %v380_v1, 7  ;;  %v407_v13 = vsub.s32 7, %v380_v1 }
  0x45   : > { %s344_s13 = sadd.s32 %s714_s12, %s342_s11  ;;  %p717_p4 = scmp.lt.s32.totalorder %s716_s6, 1  ;;  %vm387_vm1 = vcmp.eq.s32.totalorder %v380_v1, 0  ;;  %vm423_vm5 = vcmp.eq.s32.totalorder %v1072_v6, 0  ;;  %vm424_vm6 = vcmp.eq.s32.totalorder %v1072_v6, 127 }
  0x46   : > { %s715_s8 = sshll.u32 %s344_s13, 3  ;;  %p362_p8 = scmp.lt.s32.totalorder %s361_s9, 1  ;;  %v473_v17 = vadd.f32 0.5, %v472_v8 }
  0x47   : > { %s1185_s2 = sld [smem:[#allocation11_spill]]  ;;  %s729_s25 = sshll.u32 %s899_s20, 3 }
  0x48   : > { %s1200_s6 = smov (!%p348_p13, %s716_s6), 0  ;;  %s1202_s9 = smov (!%p362_p8, %s361_s9), 1  ;;  %v383_v2 = vstv %s729_s25  ;;  %v474_v29 = vmul.f32 0.0078125, %v473_v17 }
  0x49   : > { %s1204_s6 = smov (!%p717_p4, %s1200_s6), 1  ;;  %s1206_s9 = smov (!%p362_p8, %s1202_s9), 1  ;;  %v384_v4 = vadd.s32 %v383_v2, %v380_v1 }
  0x4a   : > { %s355_s28 = sadd.s32 %s1204_s6, %s714_s12  ;;  %p1066_p6 = scmp.gt.s32.totalorder %s729_s25, 0 }
  0x4b   : > { %s723_s7 = sshll.u32 %s355_s28, 3  ;;  %s369_s10 = sadd.s32 %s714_s12, %s1206_s9  ;;  %v475_v7 = vcvt.s32.f32 %v384_v4  ;;  %vm395_vm3 = vcmp.ge.s32.totalorder %v384_v4, 15 }
  0x4c   : > { %s728_s6 = sshll.u32 %s369_s10, 3  ;;  %s1085_s12 = smul.u32 9, %s903_s21 }
  0x4d   : > { %s346_s17 = scalar_lea.vmem %s1185_s2, %s715_s8  ;;  %s357_s8 = scalar_lea.vmem %s1173_s3, %s723_s7  ;;  %v476_v16 = vadd.f32 0.5, %v475_v7 }
  0x4e   : > { %v1070_v3 = vld [vmem:[%s346_s17] sm:$0xff]  ;;  %s371_s25 = scalar_lea.vmem %s1174_s4, %s728_s6  ;;  %s1088_s17 = sld [smem:[#allocation4 + %s903_s21]] }
  0x4f   : > { %v378_v9 = vld [vmem:[%s371_s25] sm:$0xff]  ;;  %v386_v10 = vrot.slane %v1070_v3, 1  ;;  %s390_s9 = scalar_select %p1066_p6, 1, 0  ;;  %v385_v15 = vrot.slane %v1070_v3, 7  ;;  %v477_v25 = vmul.f32 0.0625, %v476_v16 }
  0x50   : > { %v377_v11 = vld [vmem:[%s357_s8] sm:$0xff]  ;;  %v401_v12 = vrot.slane %v378_v9, %v400_v5  ;;  %s456_s28 = sadd.s32 1, %s1085_s12  ;;  %s462_s29 = sadd.s32 4, %s1085_s12  ;;  %vm447_vm4 = vcmp.lt.f32.partialorder %v1070_v3, inf }
  0x51   : > { %v391_v14 = vstv %s390_s9  ;;  %s457_s7 = sld [smem:[#allocation2 + %s456_s28]]  ;;  %s468_s11 = sadd.s32 7, %s1085_s12 }
  0x52   : > { %vm392_vm2 = vcmp.eq.s32.totalorder %v391_v14, 1  ;;  %v402_v19 = vsel %vm388_vm0, %v401_v12, %v386_v10  ;;  %s1093_s10 = sld [smem:[#allocation2 + %s462_s29]]  ;;  %s458_s6 = sadd.s32 2, %s1085_s12  ;;  %v921_v10 = vmov 0.0  }
  0x53   : > { %v393_v18 = vsel %vm392_vm2, %v377_v11, -inf  ;;  %v394_v20 = vsel %vm392_vm2, %v377_v11, inf  ;;  %s1097_s13 = sld [smem:[#allocation2 + %s1085_s12]]  ;;  %v417_v24 = vsel %vm395_vm3, -inf, %v402_v19  ;;  %s460_s16 = sadd.s32 3, %s1085_s12  ;;  %v418_v30 = vsel %vm395_vm3, inf, %v402_v19 }
  0x54   : > { %v408_v21 = vrot.slane %v393_v18, %v407_v13  ;;  %v413_v22 = vrot.slane %v394_v20, %v407_v13  ;;  %s1099_s8 = sld [smem:[#allocation2 + %s468_s11]]  ;;  %s464_s9 = sadd.s32 5, %s1085_s12  ;;  %v448_v43 = vstv %s1088_s17  ;;  %v922_v11 = vmov 1.0  }
  0x55   : > { %s1105_s15 = sld [smem:[#allocation2 + %s458_s6]]  ;;  %s466_s29 = sadd.s32 6, %s1085_s12  ;;  %v449_v51 = vsel %vm447_vm4, %v1070_v3, %v448_v43 }
  0x56   : > { %v409_v23 = vsel %vm387_vm1, %v408_v21, %v385_v15  ;;  %v414_v26 = vsel %vm387_vm1, %v413_v22, %v385_v15  ;;  %s461_s25 = sld [smem:[#allocation2 + %s460_s16]]  ;;  %s470_s6 = sadd.s32 8, %s1085_s12  ;;  %v450_v7 = vmul.f32 0.05, %v449_v51  ;;  %vm452_vm7 = vcmp.ge.f32.partialorder %v449_v51, 0.0 }
  0x57   : > { %v419_v27 = vmax.f32 %v1070_v3, %v409_v23  ;;  %v421_v28 = vmin.f32 %v1070_v3, %v414_v26  ;;  %s1112_s28 = sld [smem:[#allocation2 + %s464_s9]]  ;;  %v480_v32 = vstv %s457_s7  ;;  %s336_s1 = sand.u32 1, %s891_s18   ;;  %vm507_vm8 = vcmp.lt.f32.partialorder %v449_v51, 0.0 }
  0x58   : > { %v489_v33 = vstv %s1093_s10  ;;  %s467_s11 = sld [smem:[#allocation2 + %s466_s29]]  ;;  %v481_v34 = vmul.f32 %v480_v32, %v477_v25  ;;  %s919_s16 = smov 1  }
  0x59   : > { %v420_v31 = vmax.f32 %v419_v27, %v417_v24  ;;  %s1117_s0 = sld [smem:[#allocation2 + %s470_s6]]  ;;  %v478_v35 = vstv %s1097_s13  ;;  %s920_s2 = smov 127   ;;  %v422_v37 = vmin.f32 %v421_v28, %v418_v30  ;;  %v490_v39 = vmul.f32 %v489_v33, %v477_v25 }
  0x5a   : > { %v499_v36 = vstv %s1099_s8  ;;  %v479_v38 = vmul.f32 %v478_v35, %v474_v29  ;;  %s740_s7 = smul.u32 40, %s336_s1 }
  0x5b   : > { %425 = vrot.lane.b32.xlu0 %v420_v31, %s919_s16  ;;  %430 = vrot.lane.b32.xlu1 %v420_v31, %s920_s2  ;;  %v483_v40 = vstv %s1105_s15  ;;  %v500_v44 = vmul.f32 %v499_v36, %v477_v25 }
  0x5c   : > { %v482_v41 = vadd.f32 %v481_v34, %v479_v38  ;;  %v487_v42 = vstv %s461_s25  ;;  %s1128_s1 = scalar_lea.vmem [#allocation6], %s740_s7 }
  0x5d   : > { %v488_v45 = vmul.f32 %v487_v42, %v474_v29  ;;  %v492_v47 = vstv %s1112_s28 }
  0x5e   : > { %v484_v46 = vadd.f32 %v483_v40, %v482_v41  ;;  %v497_v48 = vstv %s467_s11 }
  0x5f   : > { %435 = vrot.lane.b32.xlu0 %v422_v37, %s919_s16  ;;  %438 = vrot.lane.b32.xlu1 %v422_v37, %s920_s2  ;;  %v491_v49 = vadd.f32 %v490_v39, %v488_v45  ;;  %v498_v50 = vmul.f32 %v497_v48, %v474_v29  ;;  %v502_v52 = vstv %s1117_s0  ;;  %s741_s0 = smul.u32 (%p1000_p5), 10, %s903_s21 }
  0x60   : > { %v485_v53 = vmul.f32 %v484_v46, %v449_v51 }
  0x61   : > { %v493_v54 = vadd.f32 %v492_v47, %v491_v49  ;;  %v501_v55 = vadd.f32 %v500_v44, %v498_v50  ;;  %s524_s2 = sadd.s32 (%p1000_p5), %s899_s20, %s741_s0 }
  0x62   : > { %486 = vst [vmem:[%s1128_s1] sm:$0xff] %v485_v53  ;;  %s735_s18 = sshll.u32 (%p1000_p5), %s524_s2, 3 }
  0x63   : > { %v503_v56 = vadd.f32 %v502_v52, %v501_v55  ;;  %v494_v57 = vmul.f32 %v493_v54, %v449_v51  ;;  %s526_s30 = scalar_lea.vmem (%p1000_p5), %s1175_s5, %s735_s18 }
  0x65   : > { %v504_v58 = vmul.f32 %v503_v56, %v449_v51  ;;  %730 = vst [vmem:[%s1128_s1 + $0x8] sm:$0xff] %v494_v57 }
  0x67   : > { %731 = vst [vmem:[%s1128_s1 + $0x10] sm:$0xff] %v504_v58 }
  0x69   : > { %v562_v13 = vld [vmem:[%s1128_s1] sm:$0xff] (%p1000_p5) }
  0x6a   : > { %563 = vst [vmem:[%s526_s30] sm:$0xff] (%p1000_p5), %v562_v13 }
  0x6c   : > { %v564_v14 = vld [vmem:[%s1128_s1 + $0x8] sm:$0xff] (%p1000_p5) }
  0x6d   : > { %565 = vst [vmem:[%s526_s30 + $0x10] sm:$0xff] (%p1000_p5), %v564_v14 }
  0x6e   : > { %v566_v15 = vld [vmem:[%s1128_s1 + $0x10] sm:$0xff] (%p1000_p5) }
  0x6f   : > { %567 = vst [vmem:[%s526_s30 + $0x20] sm:$0xff] (%p1000_p5), %v566_v15 }
  0xcd   : > { %v426_v59 = vpop.permute.xlu0 %425  ;;  %v431_v60 = vpop.permute.xlu1 %430 }
  0xce   : > { %v429_v61 = vsel %vm423_vm5, -inf, %v426_v59  ;;  %v434_v1 = vsel %vm424_vm6, -inf, %v431_v60 }
  0xcf   : > { %v441_v62 = vmax.f32 %v420_v31, %v429_v61 }
  0xd1   : > { %v436_v63 = vpop.permute.xlu0 %435  ;;  %v439_v0 = vpop.permute.xlu1 %438  ;;  %v442_v5 = vmax.f32 %v441_v62, %v434_v1 }
  0xd2   : > { %v437_v2 = vsel %vm423_vm5, inf, %v436_v63  ;;  %v440_v3 = vsel %vm424_vm6, inf, %v439_v0 }
  0xd3   : > { %v443_v4 = vmin.f32 %v422_v37, %v437_v2 }
  0xd5   : > { %v444_v8 = vmin.f32 %v443_v4, %v440_v3 }
  0xd7   : > { %v445_v9 = vsub.f32 %v442_v5, %v444_v8  ;;  %522 = sbr.rel (!%p1000_p5) target bundleno = 230 (0xe6), region = 52 }
  0xd9   : > { %vm451_vm9 = vcmp.gt.f32.partialorder %v445_v9, %v450_v7 }
  0xda   : > { %vm453_vm10 = vmand %vm451_vm9, %vm452_vm7 }
  0xdb   : > { %vm508_vm11 = vmor %vm453_vm10, %vm507_vm8  ;;  %v733_v6 = vsel %vm453_vm10, 1.0, %v921_v10 }
  0xdc   : > { %v509_v12 = vsel %vm508_vm11, -1.0, %v922_v11  ;;  %734 = vst [vmem:[%s1128_s1 + $0x20] sm:$0xff] %v733_v6 }
  0xdd   : > { %732 = vst [vmem:[%s1128_s1 + $0x18] sm:$0xff] %v509_v12 }
  0xe3   : > { %v570_v17 = vld [vmem:[%s1128_s1 + $0x20] sm:$0xff] }
  0xe4   : > { %v568_v16 = vld [vmem:[%s1128_s1 + $0x18] sm:$0xff]  ;;  %571 = vst [vmem:[%s526_s30 + $0x40] sm:$0xff] %v570_v17 }
  0xe5   : > { %569 = vst [vmem:[%s526_s30 + $0x30] sm:$0xff] %v568_v16 }
  0xe6 PF: > { %s17_s24 = sadd.s32 1, %s915_s24   ;;  %s1187_s18 = smov %s895_s19 }
  0xe7   : > { %p14_p5 = scmp.ge.s32.totalorder %s17_s24, 6   ;;  %s1188_s19 = smov %s1029_s14 }
  0xe8   : > { %s1189_s20 = smov %s907_s22  ;;  %s1190_s21 = smov %s911_s23 }
  0xe9   : > { %s1191_s22 = smov %s1194_s26  ;;  %s1192_s23 = smov %s1198_s27 }
  0xea   :  { %16 = sbr.rel (!%p14_p5) target bundleno = 9 (0x9), region = 127 }
  0xf1   :  { %587 = vsyncpa [#allocation3], 1 }
  0xf2   :  { %589 = vsyncpa [#allocation3 + $0x1], 1 }
  0xf3   :  { %590 = vsyncpa [#allocation5], 1 }

</bundles_post_ra>
